<compile_context>
chip_gen: v7x
topology: tpu7x:2x2x1
jax: 0.10.0
libtpu: 0.0.40
codegen_flags: <defaults>
</compile_context>

<pallas_src>
import functools

import jax
import jax.numpy as jnp
from jax.experimental import pallas as pl
from jax.experimental.pallas import tpu as pltpu

KW = 4            # conv kernel size
PADW = 2          # int(np.ceil((4 - 1) / 2)) == 2
BN_EPS = 1e-5
LEAKY_SLOPE = 0.2

_LANE = 128       # TPU lane width (last-dim alignment)
_SUBLANE = 8      # sublane alignment for the second-to-last dim
_TM_MAX = 512     # row tile   (multiple of 256 -> good MXU occupancy v6e/v7x)
_TK_MAX = 512     # reduction-dim tile


def _round_up(v, m):
    return (v + m - 1) // m * m


# --------------------------------------------------------------------------- #
# Pallas kernels
# --------------------------------------------------------------------------- #
def _matmul_bias_act_kernel(x_ref, w_ref, b_ref, o_ref, acc_ref, *, slope):
    """Tiled (TM,TK)x(TK,Coutp) matmul + bias [+ LeakyReLU].

    Grid = (M tiles, K tiles); K is the last ("arbitrary") axis, accumulated
    into an f32 VMEM scratch, finalized with pl.when.
    """
    k = pl.program_id(1)

    @pl.when(k == 0)
    def _():
        acc_ref[...] = jnp.zeros_like(acc_ref)

    acc_ref[...] += jnp.dot(x_ref[...], w_ref[...],
                            preferred_element_type=jnp.float32)

    @pl.when(k == pl.num_programs(1) - 1)
    def _():
        y = acc_ref[...] + b_ref[...]
        if slope is not None:
            y = jnp.where(y > 0.0, y, slope * y)
        o_ref[...] = y.astype(o_ref.dtype)


def _matmul_stats_kernel(x_ref, w_ref, y_ref, sum_ref, sq_ref):
    """Tiled matmul (no bias: it cancels under BatchNorm) + per-channel stats.

    y accumulates directly into the f32 output block (resident across the K
    axis).  Per-channel sum / sum-of-squares accumulate into tiny outputs that
    are resident across the WHOLE grid (constant index_map), hence both grid
    axes are "arbitrary" (sequential) for this kernel.
    """
    i = pl.program_id(0)
    k = pl.program_id(1)

    @pl.when((i == 0) & (k == 0))
    def _():
        sum_ref[...] = jnp.zeros_like(sum_ref)
        sq_ref[...] = jnp.zeros_like(sq_ref)

    @pl.when(k == 0)
    def _():
        y_ref[...] = jnp.zeros_like(y_ref)

    y_ref[...] += jnp.dot(x_ref[...], w_ref[...],
                          preferred_element_type=jnp.float32)

    @pl.when(k == pl.num_programs(1) - 1)
    def _():
        y = y_ref[...]
        sum_ref[...] += jnp.sum(y, axis=0, keepdims=True)
        sq_ref[...] += jnp.sum(y * y, axis=0, keepdims=True)


def _bn_act_kernel(y_ref, scale_ref, shift_ref, o_ref, *, slope):
    """Folded BatchNorm (y*scale + shift) + LeakyReLU, tiled over rows."""
    y = y_ref[...] * scale_ref[...] + shift_ref[...]
    if slope is not None:
        y = jnp.where(y > 0.0, y, slope * y)
    o_ref[...] = y.astype(o_ref.dtype)


# --------------------------------------------------------------------------- #
# Per-layer glue
# --------------------------------------------------------------------------- #
def _tile_sizes(M, K, Cout):
    TM = min(_TM_MAX, _round_up(M, _SUBLANE))
    Mp = _round_up(M, TM)
    Kp = _round_up(K, _LANE)
    if Kp > _TK_MAX:
        TK = _TK_MAX
        Kp = _round_up(K, TK)
    else:
        TK = Kp
    Coutp = _round_up(Cout, _LANE)
    return TM, Mp, TK, Kp, Coutp


def _im2col(x_nhwc, stride, OH, OW):
    """(N,H,W,Cin) -> (N*OH*OW, 16*Cin) patch matrix.

    Tap order (kh-major, kw, then channel) matches the OIHW->(kh,kw,cin,cout)
    weight reshape below.
    """
    N, H, W, Cin = x_nhwc.shape
    xp = jnp.pad(x_nhwc, ((0, 0), (PADW, PADW), (PADW, PADW), (0, 0)))
    taps = []
    for kh in range(KW):
        for kw in range(KW):
            taps.append(xp[:, kh:kh + stride * OH:stride,
                           kw:kw + stride * OW:stride, :])
    patches = jnp.stack(taps, axis=3)                 # (N, OH, OW, 16, Cin)
    return patches.reshape(N * OH * OW, KW * KW * Cin)


def _conv_layer(x_nhwc, p, *, out_dtype):
    """One Conv2d(k=4, pad=2, stride) [+BatchNorm] [+LeakyReLU] layer."""
    stride, use_bn, slope = p["stride"], p["use_bn"], p["leaky"]
    w_oihw = p["w"]
    N, H, W, Cin = x_nhwc.shape
    Cout = w_oihw.shape[0]
    OH = (H + 2 * PADW - KW) // stride + 1
    OW = (W + 2 * PADW - KW) // stride + 1
    M, K = N * OH * OW, KW * KW * Cin
    TM, Mp, TK, Kp, Coutp = _tile_sizes(M, K, Cout)
    gm, gk = Mp // TM, Kp // TK

    # im2col in bf16 (MXU-native, half the HBM bytes).  Padded rows/cols are
    # exact zeros so they never perturb results or (bias-free) BN statistics.
    x_mat = _im2col(x_nhwc.astype(jnp.bfloat16), stride, OH, OW)
    x_mat = jnp.pad(x_mat, ((0, Mp - M), (0, Kp - K)))

    # PyTorch OIHW -> (kh, kw, cin, cout) -> (K, Cout), pad + bf16.
    w_mat = jnp.transpose(w_oihw, (2, 3, 1, 0)).reshape(K, Cout)
    w_mat = jnp.pad(w_mat, ((0, Kp - K), (0, Coutp - Cout))).astype(jnp.bfloat16)

    if not use_bn:
        bias = jnp.pad(p["b"], (0, Coutp - Cout)).reshape(1, Coutp)
        kernel = functools.partial(_matmul_bias_act_kernel, slope=slope)
        y = pl.pallas_call(
            kernel,
            out_shape=jax.ShapeDtypeStruct((Mp, Coutp), out_dtype),
            grid=(gm, gk),
            in_specs=[
                pl.BlockSpec((TM, TK), lambda i, k: (i, k)),
                pl.BlockSpec((TK, Coutp), lambda i, k: (k, 0)),
                pl.BlockSpec((1, Coutp), lambda i, k: (0, 0)),
            ],
            out_specs=pl.BlockSpec((TM, Coutp), lambda i, k: (i, 0)),
            scratch_shapes=[pltpu.VMEM((TM, Coutp), jnp.float32)],
            compiler_params=pltpu.CompilerParams(
                dimension_semantics=("parallel", "arbitrary")),
        )(x_mat, w_mat, bias)
    else:
        # ---- pass 1: matmul + per-channel sum / sumsq (bias dropped: it
        #      cancels exactly under BatchNorm mean subtraction). ----
        y_f32, s1, s2 = pl.pallas_call(
            _matmul_stats_kernel,
            out_shape=(jax.ShapeDtypeStruct((Mp, Coutp), jnp.float32),
                       jax.ShapeDtypeStruct((1, Coutp), jnp.float32),
                       jax.ShapeDtypeStruct((1, Coutp), jnp.float32)),
            grid=(gm, gk),
            in_specs=[
                pl.BlockSpec((TM, TK), lambda i, k: (i, k)),
                pl.BlockSpec((TK, Coutp), lambda i, k: (k, 0)),
            ],
            out_specs=(pl.BlockSpec((TM, Coutp), lambda i, k: (i, 0)),
                       pl.BlockSpec((1, Coutp), lambda i, k: (0, 0)),
                       pl.BlockSpec((1, Coutp), lambda i, k: (0, 0))),
            compiler_params=pltpu.CompilerParams(
                # Stats accumulate across the M axis -> keep it sequential.
                dimension_semantics=("arbitrary", "arbitrary")),
        )(x_mat, w_mat)

        # Fold batch statistics into a per-channel scale/shift (f32 glue).
        inv_m = jnp.float32(1.0 / M)              # padded rows are exact zeros
        mean = s1[0] * inv_m
        var = jnp.maximum(s2[0] * inv_m - mean * mean, 0.0)   # biased variance
        gamma = jnp.pad(p["gamma"], (0, Coutp - Cout))
        beta = jnp.pad(p["beta"], (0, Coutp - Cout))
        scale = gamma * jax.lax.rsqrt(var + BN_EPS)
        shift = beta - mean * scale

        # ---- pass 2: normalize + affine + LeakyReLU, tiled over rows. ----
        kernel = functools.partial(_bn_act_kernel, slope=slope)
        y = pl.pallas_call(
            kernel,
            out_shape=jax.ShapeDtypeStruct((Mp, Coutp), out_dtype),
            grid=(gm,),
            in_specs=[
                pl.BlockSpec((TM, Coutp), lambda i: (i, 0)),
                pl.BlockSpec((1, Coutp), lambda i: (0, 0)),
                pl.BlockSpec((1, Coutp), lambda i: (0, 0)),
            ],
            out_specs=pl.BlockSpec((TM, Coutp), lambda i: (i, 0)),
            compiler_params=pltpu.CompilerParams(
                dimension_semantics=("parallel",)),
        )(y_f32, scale.reshape(1, Coutp), shift.reshape(1, Coutp))

    return y[:M, :Cout].reshape(N, OH, OW, Cout)


# --------------------------------------------------------------------------- #
# Model construction (mirrors NLayerDiscriminator.__init__ defaults)
# --------------------------------------------------------------------------- #
def _build_layer_configs(input_nc, ndf, n_layers):
    cfgs = [dict(cin=input_nc, cout=ndf, stride=2, use_bn=False,
                 leaky=LEAKY_SLOPE)]
    nf = ndf
    for _ in range(1, n_layers):
        nf_prev, nf = nf, min(nf * 2, 512)
        cfgs.append(dict(cin=nf_prev, cout=nf, stride=2, use_bn=True,
                         leaky=LEAKY_SLOPE))
    nf_prev, nf = nf, min(nf * 2, 512)
    cfgs.append(dict(cin=nf_prev, cout=nf, stride=1, use_bn=True,
                     leaky=LEAKY_SLOPE))
    cfgs.append(dict(cin=nf, cout=1, stride=1, use_bn=False, leaky=None))
    return cfgs


def init_params(key, input_nc, ndf, n_layers):
    cfgs = _build_layer_configs(input_nc, ndf, n_layers)
    params = []
    for cfg in cfgs:
        key, wk, bk, gk, ok = jax.random.split(key, 5)
        w = 0.05 * jax.random.normal(
            wk, (cfg["cout"], cfg["cin"], KW, KW), dtype=jnp.float32)
        b = 0.1 * jax.random.normal(bk, (cfg["cout"],), dtype=jnp.float32)
        gamma = 1.0 + 0.1 * jax.random.normal(gk, (cfg["cout"],),
                                              dtype=jnp.float32)
        beta = 0.1 * jax.random.normal(ok, (cfg["cout"],), dtype=jnp.float32)
        params.append(dict(w=w, b=b, gamma=gamma, beta=beta, **cfg))
    return params


def nlayer_discriminator_forward(x_nchw, params):
    # NCHW (PyTorch convention) -> NHWC for the kernels.
    x = jnp.transpose(x_nchw, (0, 2, 3, 1))
    n = len(params)
    for idx, p in enumerate(params):
        last = idx == n - 1
        # Intermediate activations are carried in bf16 (next layer's matmul
        # operand); the final layer output is f32 like PyTorch.
        x = _conv_layer(x, p, out_dtype=jnp.float32 if last else jnp.bfloat16)
    return jnp.transpose(x, (0, 3, 1, 2))


# --------------------------------------------------------------------------- #
# Pure-JAX reference (same bf16 operand rounding) for a correctness check.
# --------------------------------------------------------------------------- #
def _reference_forward(x_nchw, params):
    x = jnp.transpose(x_nchw, (0, 2, 3, 1)).astype(jnp.float32)
    for p in params:
        s = p["stride"]
        xb = x.astype(jnp.bfloat16).astype(jnp.float32)
        wb = p["w"].astype(jnp.bfloat16).astype(jnp.float32)
        w_hwio = jnp.transpose(wb, (2, 3, 1, 0))
        y = jax.lax.conv_general_dilated(
            xb, w_hwio, window_strides=(s, s),
            padding=((PADW, PADW), (PADW, PADW)),
            dimension_numbers=("NHWC", "HWIO", "NHWC"))
        y = y + p["b"].reshape(1, 1, 1, -1)
        if p["use_bn"]:
            mean = jnp.mean(y, axis=(0, 1, 2), keepdims=True)
            var = jnp.mean((y - mean) ** 2, axis=(0, 1, 2), keepdims=True)
            y = (y - mean) * jax.lax.rsqrt(var + BN_EPS)
            y = y * p["gamma"].reshape(1, 1, 1, -1) + p["beta"].reshape(1, 1, 1, -1)
        if p["leaky"] is not None:
            y = jnp.where(y > 0, y, p["leaky"] * y)
        x = y
    return jnp.transpose(x, (0, 3, 1, 2))


# --------------------------------------------------------------------------- #
if __name__ == "__main__":
    N, C, H, W = 2, 4, 16, 16          # small synthetic input
    NDF, N_LAYERS = 8, 3

    key = jax.random.PRNGKey(0)
    kx, kp = jax.random.split(key)
    x = jax.random.normal(kx, (N, C, H, W), dtype=jnp.float32)
    params = init_params(kp, input_nc=C, ndf=NDF, n_layers=N_LAYERS)

    fwd = jax.jit(lambda inp: nlayer_discriminator_forward(inp, params))
    out = jax.block_until_ready(fwd(x))

    # 16 -> 9 -> 5 -> 3 (stride-2 x3), -> 4 (stride-1), -> 5 (stride-1), Cout=1
    assert out.shape == (N, 1, 5, 5), out.shape
    assert bool(jnp.all(jnp.isfinite(out)))

    ref = jax.block_until_ready(_reference_forward(x, params))
    max_err = float(jnp.max(jnp.abs(out - ref)))
    assert max_err < 0.15, f"max abs err vs reference: {max_err}"

    print("KERNEL_OK")
</pallas_src>

<mosaic_0001>
module attributes {stable_mosaic.version = 11 : i64} {
  func.func @_matmul_bias_act_kernel(%arg0: i32, %arg1: i32, %arg2: memref<168x128xbf16, #tpu.memory_space<vmem>>, %arg3: memref<128x128xbf16, #tpu.memory_space<vmem>>, %arg4: memref<1x128xf32, #tpu.memory_space<vmem>>, %arg5: memref<168x128xbf16, #tpu.memory_space<vmem>>, %arg6: memref<168x128xf32, #tpu.memory_space<vmem>>) attributes {dimension_semantics = [#tpu.dimension_semantics<parallel>, #tpu.dimension_semantics<arbitrary>], iteration_bounds = array<i64: 1, 1>, scalar_prefetch = 0 : i64, scratch_operands = 1 : i64, tpu.core_type = #tpu.core_type<tc>, window_params = [{transform_indices = @transform_0, window_bounds = array<i64: 168, 128>}, {transform_indices = @transform_1, window_bounds = array<i64: 128, 128>}, {pipeline_mode = #tpu.pipeline_mode<synchronous>, transform_indices = @transform_2, window_bounds = array<i64: 1, 128>}, {transform_indices = @transform_3, window_bounds = array<i64: 168, 128>}]} {
    %c0_i32 = arith.constant 0 : i32
    %0 = arith.cmpi eq, %arg1, %c0_i32 : i32
    %1 = arith.extui %0 : i1 to i32
    %c0_i32_0 = arith.constant 0 : i32
    %2 = arith.cmpi ne, %1, %c0_i32_0 : i32
    scf.if %2 {
      %cst_10 = arith.constant 0.000000e+00 : f32
      %12 = vector.broadcast %cst_10 : f32 to vector<168x128xf32>
      %c0_11 = arith.constant 0 : index
      %c0_12 = arith.constant 0 : index
      %13 = vector.load %arg6[%c0_11, %c0_12] : memref<168x128xf32, #tpu.memory_space<vmem>>, vector<168x128xf32>
      tpu.vector_store %arg6[%c0_11, %c0_12], %12 {strides = array<i32>} : memref<168x128xf32, #tpu.memory_space<vmem>>, vector<168x128xf32>,
    } else {
    }
    %c0 = arith.constant 0 : index
    %c0_1 = arith.constant 0 : index
    %3 = vector.load %arg6[%c0, %c0_1] : memref<168x128xf32, #tpu.memory_space<vmem>>, vector<168x128xf32>
    %c0_2 = arith.constant 0 : index
    %c0_3 = arith.constant 0 : index
    %4 = vector.load %arg2[%c0_2, %c0_3] : memref<168x128xbf16, #tpu.memory_space<vmem>>, vector<168x128xbf16>
    %c0_4 = arith.constant 0 : index
    %c0_5 = arith.constant 0 : index
    %5 = vector.load %arg3[%c0_4, %c0_5] : memref<128x128xbf16, #tpu.memory_space<vmem>>, vector<128x128xbf16>
    %cst = arith.constant dense<0.000000e+00> : vector<168x128xf32>
    %6 = tpu.matmul %4, %5, %cst {dimension_numbers = #tpu.dot_dimension_numbers<[1], [0], [0], [1], [0, 0, 1, 1], [], []>} : vector<168x128xbf16>, vector<128x128xbf16>, vector<168x128xf32> -> vector<168x128xf32>
    %7 = arith.addf %3, %6 : vector<168x128xf32>
    %c0_6 = arith.constant 0 : index
    %c0_7 = arith.constant 0 : index
    %8 = vector.load %arg6[%c0_6, %c0_7] : memref<168x128xf32, #tpu.memory_space<vmem>>, vector<168x128xf32>
    tpu.vector_store %arg6[%c0_6, %c0_7], %7 {strides = array<i32>} : memref<168x128xf32, #tpu.memory_space<vmem>>, vector<168x128xf32>,
    %c0_i32_8 = arith.constant 0 : i32
    %9 = arith.cmpi eq, %arg1, %c0_i32_8 : i32
    %10 = arith.extui %9 : i1 to i32
    %c0_i32_9 = arith.constant 0 : i32
    %11 = arith.cmpi ne, %10, %c0_i32_9 : i32
    scf.if %11 {
      %c0_10 = arith.constant 0 : index
      %c0_11 = arith.constant 0 : index
      %12 = vector.load %arg6[%c0_10, %c0_11] : memref<168x128xf32, #tpu.memory_space<vmem>>, vector<168x128xf32>
      %c0_12 = arith.constant 0 : index
      %c0_13 = arith.constant 0 : index
      %13 = vector.load %arg4[%c0_12, %c0_13] : memref<1x128xf32, #tpu.memory_space<vmem>>, vector<1x128xf32>
      %14 = vector.broadcast %13 : vector<1x128xf32> to vector<168x128xf32>
      %15 = arith.addf %12, %14 : vector<168x128xf32>
      %cst_14 = arith.constant 0.000000e+00 : f32
      %16 = vector.broadcast %cst_14 : f32 to vector<168x128xf32>
      %17 = arith.cmpf ogt, %15, %16 : vector<168x128xf32>
      %cst_15 = arith.constant 2.000000e-01 : f32
      %18 = vector.broadcast %cst_15 : f32 to vector<168x128xf32>
      %19 = arith.mulf %18, %15 : vector<168x128xf32>
      %20 = arith.select %17, %15, %19 : vector<168x128xi1>, vector<168x128xf32>
      %21 = arith.truncf %20 : vector<168x128xf32> to vector<168x128xbf16>
      %c0_16 = arith.constant 0 : index
      %c0_17 = arith.constant 0 : index
      %22 = vector.load %arg5[%c0_16, %c0_17] : memref<168x128xbf16, #tpu.memory_space<vmem>>, vector<168x128xbf16>
      tpu.vector_store %arg5[%c0_16, %c0_17], %21 {strides = array<i32>} : memref<168x128xbf16, #tpu.memory_space<vmem>>, vector<168x128xbf16>,
    } else {
    }
    return
  }
  func.func @transform_0(%arg0: i32, %arg1: i32) -> (i32, i32) {
    %c0_i32 = arith.constant 0 : i32
    return %arg0, %arg1 : i32, i32
  }
  func.func @transform_1(%arg0: i32, %arg1: i32) -> (i32, i32) {
    %c0_i32 = arith.constant 0 : i32
    %c0_i32_0 = arith.constant 0 : i32
    return %arg1, %c0_i32 : i32, i32
  }
  func.func @transform_2(%arg0: i32, %arg1: i32) -> (i32, i32) {
    %c0_i32 = arith.constant 0 : i32
    %c0_i32_0 = arith.constant 0 : i32
    %c0_i32_1 = arith.constant 0 : i32
    return %c0_i32, %c0_i32_0 : i32, i32
  }
  func.func @transform_3(%arg0: i32, %arg1: i32) -> (i32, i32) {
    %c0_i32 = arith.constant 0 : i32
    %c0_i32_0 = arith.constant 0 : i32
    return %arg0, %c0_i32 : i32, i32
  }
}

module attributes {stable_mosaic.version = 11 : i64} {
  func.func @_bn_act_kernel(%arg0: i32, %arg1: memref<56x128xf32, #tpu.memory_space<vmem>>, %arg2: memref<1x128xf32, #tpu.memory_space<vmem>>, %arg3: memref<1x128xf32, #tpu.memory_space<vmem>>, %arg4: memref<56x128xbf16, #tpu.memory_space<vmem>>) attributes {dimension_semantics = [#tpu.dimension_semantics<parallel>], iteration_bounds = array<i64: 1>, scalar_prefetch = 0 : i64, scratch_operands = 0 : i64, tpu.core_type = #tpu.core_type<tc>, window_params = [{transform_indices = @transform_0, window_bounds = array<i64: 56, 128>}, {pipeline_mode = #tpu.pipeline_mode<synchronous>, transform_indices = @transform_1, window_bounds = array<i64: 1, 128>}, {pipeline_mode = #tpu.pipeline_mode<synchronous>, transform_indices = @transform_2, window_bounds = array<i64: 1, 128>}, {transform_indices = @transform_3, window_bounds = array<i64: 56, 128>}]} {
    %c0 = arith.constant 0 : index
    %c0_0 = arith.constant 0 : index
    %0 = vector.load %arg1[%c0, %c0_0] : memref<56x128xf32, #tpu.memory_space<vmem>>, vector<56x128xf32>
    %c0_1 = arith.constant 0 : index
    %c0_2 = arith.constant 0 : index
    %1 = vector.load %arg2[%c0_1, %c0_2] : memref<1x128xf32, #tpu.memory_space<vmem>>, vector<1x128xf32>
    %2 = vector.broadcast %1 : vector<1x128xf32> to vector<56x128xf32>
    %3 = arith.mulf %0, %2 : vector<56x128xf32>
    %c0_3 = arith.constant 0 : index
    %c0_4 = arith.constant 0 : index
    %4 = vector.load %arg3[%c0_3, %c0_4] : memref<1x128xf32, #tpu.memory_space<vmem>>, vector<1x128xf32>
    %5 = vector.broadcast %4 : vector<1x128xf32> to vector<56x128xf32>
    %6 = arith.addf %3, %5 : vector<56x128xf32>
    %cst = arith.constant 0.000000e+00 : f32
    %7 = vector.broadcast %cst : f32 to vector<56x128xf32>
    %8 = arith.cmpf ogt, %6, %7 : vector<56x128xf32>
    %cst_5 = arith.constant 2.000000e-01 : f32
    %9 = vector.broadcast %cst_5 : f32 to vector<56x128xf32>
    %10 = arith.mulf %9, %6 : vector<56x128xf32>
    %11 = arith.select %8, %6, %10 : vector<56x128xi1>, vector<56x128xf32>
    %12 = arith.truncf %11 : vector<56x128xf32> to vector<56x128xbf16>
    %c0_6 = arith.constant 0 : index
    %c0_7 = arith.constant 0 : index
    %13 = vector.load %arg4[%c0_6, %c0_7] : memref<56x128xbf16, #tpu.memory_space<vmem>>, vector<56x128xbf16>
    tpu.vector_store %arg4[%c0_6, %c0_7], %12 {strides = array<i32>} : memref<56x128xbf16, #tpu.memory_space<vmem>>, vector<56x128xbf16>,
    return
  }
  func.func @transform_0(%arg0: i32) -> (i32, i32) {
    %c0_i32 = arith.constant 0 : i32
    %c0_i32_0 = arith.constant 0 : i32
    return %arg0, %c0_i32 : i32, i32
  }
  func.func @transform_1(%arg0: i32) -> (i32, i32) {
    %c0_i32 = arith.constant 0 : i32
    %c0_i32_0 = arith.constant 0 : i32
    %c0_i32_1 = arith.constant 0 : i32
    return %c0_i32, %c0_i32_0 : i32, i32
  }
  func.func @transform_2(%arg0: i32) -> (i32, i32) {
    %c0_i32 = arith.constant 0 : i32
    %c0_i32_0 = arith.constant 0 : i32
    %c0_i32_1 = arith.constant 0 : i32
    return %c0_i32, %c0_i32_0 : i32, i32
  }
  func.func @transform_3(%arg0: i32) -> (i32, i32) {
    %c0_i32 = arith.constant 0 : i32
    %c0_i32_0 = arith.constant 0 : i32
    return %arg0, %c0_i32 : i32, i32
  }
}

module attributes {stable_mosaic.version = 11 : i64} {
  func.func @_matmul_stats_kernel(%arg0: i32, %arg1: i32, %arg2: memref<56x128xbf16, #tpu.memory_space<vmem>>, %arg3: memref<128x128xbf16, #tpu.memory_space<vmem>>, %arg4: memref<56x128xf32, #tpu.memory_space<vmem>>, %arg5: memref<1x128xf32, #tpu.memory_space<vmem>>, %arg6: memref<1x128xf32, #tpu.memory_space<vmem>>) attributes {dimension_semantics = [#tpu.dimension_semantics<arbitrary>, #tpu.dimension_semantics<arbitrary>], iteration_bounds = array<i64: 1, 1>, scalar_prefetch = 0 : i64, scratch_operands = 0 : i64, tpu.core_type = #tpu.core_type<tc>, window_params = [{transform_indices = @transform_0, window_bounds = array<i64: 56, 128>}, {transform_indices = @transform_1, window_bounds = array<i64: 128, 128>}, {transform_indices = @transform_2, window_bounds = array<i64: 56, 128>}, {pipeline_mode = #tpu.pipeline_mode<synchronous>, transform_indices = @transform_3, window_bounds = array<i64: 1, 128>}, {pipeline_mode = #tpu.pipeline_mode<synchronous>, transform_indices = @transform_4, window_bounds = array<i64: 1, 128>}]} {
    %c0_i32 = arith.constant 0 : i32
    %0 = arith.cmpi eq, %arg0, %c0_i32 : i32
    %c0_i32_0 = arith.constant 0 : i32
    %1 = arith.cmpi eq, %arg1, %c0_i32_0 : i32
    %2 = arith.andi %0, %1 : i1
    %3 = arith.extui %2 : i1 to i32
    %c0_i32_1 = arith.constant 0 : i32
    %4 = arith.cmpi ne, %3, %c0_i32_1 : i32
    scf.if %4 {
      %cst_13 = arith.constant 0.000000e+00 : f32
      %17 = vector.broadcast %cst_13 : f32 to vector<1x128xf32>
      %c0_14 = arith.constant 0 : index
      %c0_15 = arith.constant 0 : index
      %18 = vector.load %arg5[%c0_14, %c0_15] : memref<1x128xf32, #tpu.memory_space<vmem>>, vector<1x128xf32>
      tpu.vector_store %arg5[%c0_14, %c0_15], %17 {strides = array<i32>} : memref<1x128xf32, #tpu.memory_space<vmem>>, vector<1x128xf32>,
      %cst_16 = arith.constant 0.000000e+00 : f32
      %19 = vector.broadcast %cst_16 : f32 to vector<1x128xf32>
      %c0_17 = arith.constant 0 : index
      %c0_18 = arith.constant 0 : index
      %20 = vector.load %arg6[%c0_17, %c0_18] : memref<1x128xf32, #tpu.memory_space<vmem>>, vector<1x128xf32>
      tpu.vector_store %arg6[%c0_17, %c0_18], %19 {strides = array<i32>} : memref<1x128xf32, #tpu.memory_space<vmem>>, vector<1x128xf32>,
    } else {
    }
    %c0_i32_2 = arith.constant 0 : i32
    %5 = arith.cmpi eq, %arg1, %c0_i32_2 : i32
    %6 = arith.extui %5 : i1 to i32
    %c0_i32_3 = arith.constant 0 : i32
    %7 = arith.cmpi ne, %6, %c0_i32_3 : i32
    scf.if %7 {
      %cst_13 = arith.constant 0.000000e+00 : f32
      %17 = vector.broadcast %cst_13 : f32 to vector<56x128xf32>
      %c0_14 = arith.constant 0 : index
      %c0_15 = arith.constant 0 : index
      %18 = vector.load %arg4[%c0_14, %c0_15] : memref<56x128xf32, #tpu.memory_space<vmem>>, vector<56x128xf32>
      tpu.vector_store %arg4[%c0_14, %c0_15], %17 {strides = array<i32>} : memref<56x128xf32, #tpu.memory_space<vmem>>, vector<56x128xf32>,
    } else {
    }
    %c0 = arith.constant 0 : index
    %c0_4 = arith.constant 0 : index
    %8 = vector.load %arg4[%c0, %c0_4] : memref<56x128xf32, #tpu.memory_space<vmem>>, vector<56x128xf32>
    %c0_5 = arith.constant 0 : index
    %c0_6 = arith.constant 0 : index
    %9 = vector.load %arg2[%c0_5, %c0_6] : memref<56x128xbf16, #tpu.memory_space<vmem>>, vector<56x128xbf16>
    %c0_7 = arith.constant 0 : index
    %c0_8 = arith.constant 0 : index
    %10 = vector.load %arg3[%c0_7, %c0_8] : memref<128x128xbf16, #tpu.memory_space<vmem>>, vector<128x128xbf16>
    %cst = arith.constant dense<0.000000e+00> : vector<56x128xf32>
    %11 = tpu.matmul %9, %10, %cst {dimension_numbers = #tpu.dot_dimension_numbers<[1], [0], [0], [1], [0, 0, 1, 1], [], []>} : vector<56x128xbf16>, vector<128x128xbf16>, vector<56x128xf32> -> vector<56x128xf32>
    %12 = arith.addf %8, %11 : vector<56x128xf32>
    %c0_9 = arith.constant 0 : index
    %c0_10 = arith.constant 0 : index
    %13 = vector.load %arg4[%c0_9, %c0_10] : memref<56x128xf32, #tpu.memory_space<vmem>>, vector<56x128xf32>
    tpu.vector_store %arg4[%c0_9, %c0_10], %12 {strides = array<i32>} : memref<56x128xf32, #tpu.memory_space<vmem>>, vector<56x128xf32>,
    %c0_i32_11 = arith.constant 0 : i32
    %14 = arith.cmpi eq, %arg1, %c0_i32_11 : i32
    %15 = arith.extui %14 : i1 to i32
    %c0_i32_12 = arith.constant 0 : i32
    %16 = arith.cmpi ne, %15, %c0_i32_12 : i32
    scf.if %16 {
      %c0_13 = arith.constant 0 : index
      %c0_14 = arith.constant 0 : index
      %17 = vector.load %arg4[%c0_13, %c0_14] : memref<56x128xf32, #tpu.memory_space<vmem>>, vector<56x128xf32>
      %c0_15 = arith.constant 0 : index
      %c0_16 = arith.constant 0 : index
      %18 = vector.load %arg5[%c0_15, %c0_16] : memref<1x128xf32, #tpu.memory_space<vmem>>, vector<1x128xf32>
      %cst_17 = arith.constant dense<0.000000e+00> : vector<128xf32>
      %19 = vector.multi_reduction <add>, %17, %cst_17 [0] : vector<56x128xf32> to vector<128xf32>
      %20 = vector.shape_cast %19 : vector<128xf32> to vector<1x128xf32>
      %21 = arith.addf %18, %20 : vector<1x128xf32>
      %c0_18 = arith.constant 0 : index
      %c0_19 = arith.constant 0 : index
      %22 = vector.load %arg5[%c0_18, %c0_19] : memref<1x128xf32, #tpu.memory_space<vmem>>, vector<1x128xf32>
      tpu.vector_store %arg5[%c0_18, %c0_19], %21 {strides = array<i32>} : memref<1x128xf32, #tpu.memory_space<vmem>>, vector<1x128xf32>,
      %c0_20 = arith.constant 0 : index
      %c0_21 = arith.constant 0 : index
      %23 = vector.load %arg6[%c0_20, %c0_21] : memref<1x128xf32, #tpu.memory_space<vmem>>, vector<1x128xf32>
      %24 = arith.mulf %17, %17 : vector<56x128xf32>
      %cst_22 = arith.constant dense<0.000000e+00> : vector<128xf32>
      %25 = vector.multi_reduction <add>, %24, %cst_22 [0] : vector<56x128xf32> to vector<128xf32>
      %26 = vector.shape_cast %25 : vector<128xf32> to vector<1x128xf32>
      %27 = arith.addf %23, %26 : vector<1x128xf32>
      %c0_23 = arith.constant 0 : index
      %c0_24 = arith.constant 0 : index
      %28 = vector.load %arg6[%c0_23, %c0_24] : memref<1x128xf32, #tpu.memory_space<vmem>>, vector<1x128xf32>
      tpu.vector_store %arg6[%c0_23, %c0_24], %27 {strides = array<i32>} : memref<1x128xf32, #tpu.memory_space<vmem>>, vector<1x128xf32>,
    } else {
    }
    return
  }
  func.func @transform_0(%arg0: i32, %arg1: i32) -> (i32, i32) {
    %c0_i32 = arith.constant 0 : i32
    return %arg0, %arg1 : i32, i32
  }
  func.func @transform_1(%arg0: i32, %arg1: i32) -> (i32, i32) {
    %c0_i32 = arith.constant 0 : i32
    %c0_i32_0 = arith.constant 0 : i32
    return %arg1, %c0_i32 : i32, i32
  }
  func.func @transform_2(%arg0: i32, %arg1: i32) -> (i32, i32) {
    %c0_i32 = arith.constant 0 : i32
    %c0_i32_0 = arith.constant 0 : i32
    return %arg0, %c0_i32 : i32, i32
  }
  func.func @transform_3(%arg0: i32, %arg1: i32) -> (i32, i32) {
    %c0_i32 = arith.constant 0 : i32
    %c0_i32_0 = arith.constant 0 : i32
    %c0_i32_1 = arith.constant 0 : i32
    return %c0_i32, %c0_i32_0 : i32, i32
  }
  func.func @transform_4(%arg0: i32, %arg1: i32) -> (i32, i32) {
    %c0_i32 = arith.constant 0 : i32
    %c0_i32_0 = arith.constant 0 : i32
    %c0_i32_1 = arith.constant 0 : i32
    return %c0_i32, %c0_i32_0 : i32, i32
  }
}

module attributes {stable_mosaic.version = 11 : i64} {
  func.func @_bn_act_kernel(%arg0: i32, %arg1: memref<24x128xf32, #tpu.memory_space<vmem>>, %arg2: memref<1x128xf32, #tpu.memory_space<vmem>>, %arg3: memref<1x128xf32, #tpu.memory_space<vmem>>, %arg4: memref<24x128xbf16, #tpu.memory_space<vmem>>) attributes {dimension_semantics = [#tpu.dimension_semantics<parallel>], iteration_bounds = array<i64: 1>, scalar_prefetch = 0 : i64, scratch_operands = 0 : i64, tpu.core_type = #tpu.core_type<tc>, window_params = [{transform_indices = @transform_0, window_bounds = array<i64: 24, 128>}, {pipeline_mode = #tpu.pipeline_mode<synchronous>, transform_indices = @transform_1, window_bounds = array<i64: 1, 128>}, {pipeline_mode = #tpu.pipeline_mode<synchronous>, transform_indices = @transform_2, window_bounds = array<i64: 1, 128>}, {transform_indices = @transform_3, window_bounds = array<i64: 24, 128>}]} {
    %c0 = arith.constant 0 : index
    %c0_0 = arith.constant 0 : index
    %0 = vector.load %arg1[%c0, %c0_0] : memref<24x128xf32, #tpu.memory_space<vmem>>, vector<24x128xf32>
    %c0_1 = arith.constant 0 : index
    %c0_2 = arith.constant 0 : index
    %1 = vector.load %arg2[%c0_1, %c0_2] : memref<1x128xf32, #tpu.memory_space<vmem>>, vector<1x128xf32>
    %2 = vector.broadcast %1 : vector<1x128xf32> to vector<24x128xf32>
    %3 = arith.mulf %0, %2 : vector<24x128xf32>
    %c0_3 = arith.constant 0 : index
    %c0_4 = arith.constant 0 : index
    %4 = vector.load %arg3[%c0_3, %c0_4] : memref<1x128xf32, #tpu.memory_space<vmem>>, vector<1x128xf32>
    %5 = vector.broadcast %4 : vector<1x128xf32> to vector<24x128xf32>
    %6 = arith.addf %3, %5 : vector<24x128xf32>
    %cst = arith.constant 0.000000e+00 : f32
    %7 = vector.broadcast %cst : f32 to vector<24x128xf32>
    %8 = arith.cmpf ogt, %6, %7 : vector<24x128xf32>
    %cst_5 = arith.constant 2.000000e-01 : f32
    %9 = vector.broadcast %cst_5 : f32 to vector<24x128xf32>
    %10 = arith.mulf %9, %6 : vector<24x128xf32>
    %11 = arith.select %8, %6, %10 : vector<24x128xi1>, vector<24x128xf32>
    %12 = arith.truncf %11 : vector<24x128xf32> to vector<24x128xbf16>
    %c0_6 = arith.constant 0 : index
    %c0_7 = arith.constant 0 : index
    %13 = vector.load %arg4[%c0_6, %c0_7] : memref<24x128xbf16, #tpu.memory_space<vmem>>, vector<24x128xbf16>
    tpu.vector_store %arg4[%c0_6, %c0_7], %12 {strides = array<i32>} : memref<24x128xbf16, #tpu.memory_space<vmem>>, vector<24x128xbf16>,
    return
  }
  func.func @transform_0(%arg0: i32) -> (i32, i32) {
    %c0_i32 = arith.constant 0 : i32
    %c0_i32_0 = arith.constant 0 : i32
    return %arg0, %c0_i32 : i32, i32
  }
  func.func @transform_1(%arg0: i32) -> (i32, i32) {
    %c0_i32 = arith.constant 0 : i32
    %c0_i32_0 = arith.constant 0 : i32
    %c0_i32_1 = arith.constant 0 : i32
    return %c0_i32, %c0_i32_0 : i32, i32
  }
  func.func @transform_2(%arg0: i32) -> (i32, i32) {
    %c0_i32 = arith.constant 0 : i32
    %c0_i32_0 = arith.constant 0 : i32
    %c0_i32_1 = arith.constant 0 : i32
    return %c0_i32, %c0_i32_0 : i32, i32
  }
  func.func @transform_3(%arg0: i32) -> (i32, i32) {
    %c0_i32 = arith.constant 0 : i32
    %c0_i32_0 = arith.constant 0 : i32
    return %arg0, %c0_i32 : i32, i32
  }
}

module attributes {stable_mosaic.version = 11 : i64} {
  func.func @_matmul_stats_kernel(%arg0: i32, %arg1: i32, %arg2: memref<24x256xbf16, #tpu.memory_space<vmem>>, %arg3: memref<256x128xbf16, #tpu.memory_space<vmem>>, %arg4: memref<24x128xf32, #tpu.memory_space<vmem>>, %arg5: memref<1x128xf32, #tpu.memory_space<vmem>>, %arg6: memref<1x128xf32, #tpu.memory_space<vmem>>) attributes {dimension_semantics = [#tpu.dimension_semantics<arbitrary>, #tpu.dimension_semantics<arbitrary>], iteration_bounds = array<i64: 1, 1>, scalar_prefetch = 0 : i64, scratch_operands = 0 : i64, tpu.core_type = #tpu.core_type<tc>, window_params = [{transform_indices = @transform_0, window_bounds = array<i64: 24, 256>}, {transform_indices = @transform_1, window_bounds = array<i64: 256, 128>}, {transform_indices = @transform_2, window_bounds = array<i64: 24, 128>}, {pipeline_mode = #tpu.pipeline_mode<synchronous>, transform_indices = @transform_3, window_bounds = array<i64: 1, 128>}, {pipeline_mode = #tpu.pipeline_mode<synchronous>, transform_indices = @transform_4, window_bounds = array<i64: 1, 128>}]} {
    %c0_i32 = arith.constant 0 : i32
    %0 = arith.cmpi eq, %arg0, %c0_i32 : i32
    %c0_i32_0 = arith.constant 0 : i32
    %1 = arith.cmpi eq, %arg1, %c0_i32_0 : i32
    %2 = arith.andi %0, %1 : i1
    %3 = arith.extui %2 : i1 to i32
    %c0_i32_1 = arith.constant 0 : i32
    %4 = arith.cmpi ne, %3, %c0_i32_1 : i32
    scf.if %4 {
      %cst_13 = arith.constant 0.000000e+00 : f32
      %17 = vector.broadcast %cst_13 : f32 to vector<1x128xf32>
      %c0_14 = arith.constant 0 : index
      %c0_15 = arith.constant 0 : index
      %18 = vector.load %arg5[%c0_14, %c0_15] : memref<1x128xf32, #tpu.memory_space<vmem>>, vector<1x128xf32>
      tpu.vector_store %arg5[%c0_14, %c0_15], %17 {strides = array<i32>} : memref<1x128xf32, #tpu.memory_space<vmem>>, vector<1x128xf32>,
      %cst_16 = arith.constant 0.000000e+00 : f32
      %19 = vector.broadcast %cst_16 : f32 to vector<1x128xf32>
      %c0_17 = arith.constant 0 : index
      %c0_18 = arith.constant 0 : index
      %20 = vector.load %arg6[%c0_17, %c0_18] : memref<1x128xf32, #tpu.memory_space<vmem>>, vector<1x128xf32>
      tpu.vector_store %arg6[%c0_17, %c0_18], %19 {strides = array<i32>} : memref<1x128xf32, #tpu.memory_space<vmem>>, vector<1x128xf32>,
    } else {
    }
    %c0_i32_2 = arith.constant 0 : i32
    %5 = arith.cmpi eq, %arg1, %c0_i32_2 : i32
    %6 = arith.extui %5 : i1 to i32
    %c0_i32_3 = arith.constant 0 : i32
    %7 = arith.cmpi ne, %6, %c0_i32_3 : i32
    scf.if %7 {
      %cst_13 = arith.constant 0.000000e+00 : f32
      %17 = vector.broadcast %cst_13 : f32 to vector<24x128xf32>
      %c0_14 = arith.constant 0 : index
      %c0_15 = arith.constant 0 : index
      %18 = vector.load %arg4[%c0_14, %c0_15] : memref<24x128xf32, #tpu.memory_space<vmem>>, vector<24x128xf32>
      tpu.vector_store %arg4[%c0_14, %c0_15], %17 {strides = array<i32>} : memref<24x128xf32, #tpu.memory_space<vmem>>, vector<24x128xf32>,
    } else {
    }
    %c0 = arith.constant 0 : index
    %c0_4 = arith.constant 0 : index
    %8 = vector.load %arg4[%c0, %c0_4] : memref<24x128xf32, #tpu.memory_space<vmem>>, vector<24x128xf32>
    %c0_5 = arith.constant 0 : index
    %c0_6 = arith.constant 0 : index
    %9 = vector.load %arg2[%c0_5, %c0_6] : memref<24x256xbf16, #tpu.memory_space<vmem>>, vector<24x256xbf16>
    %c0_7 = arith.constant 0 : index
    %c0_8 = arith.constant 0 : index
    %10 = vector.load %arg3[%c0_7, %c0_8] : memref<256x128xbf16, #tpu.memory_space<vmem>>, vector<256x128xbf16>
    %cst = arith.constant dense<0.000000e+00> : vector<24x128xf32>
    %11 = tpu.matmul %9, %10, %cst {dimension_numbers = #tpu.dot_dimension_numbers<[1], [0], [0], [1], [0, 0, 1, 1], [], []>} : vector<24x256xbf16>, vector<256x128xbf16>, vector<24x128xf32> -> vector<24x128xf32>
    %12 = arith.addf %8, %11 : vector<24x128xf32>
    %c0_9 = arith.constant 0 : index
    %c0_10 = arith.constant 0 : index
    %13 = vector.load %arg4[%c0_9, %c0_10] : memref<24x128xf32, #tpu.memory_space<vmem>>, vector<24x128xf32>
    tpu.vector_store %arg4[%c0_9, %c0_10], %12 {strides = array<i32>} : memref<24x128xf32, #tpu.memory_space<vmem>>, vector<24x128xf32>,
    %c0_i32_11 = arith.constant 0 : i32
    %14 = arith.cmpi eq, %arg1, %c0_i32_11 : i32
    %15 = arith.extui %14 : i1 to i32
    %c0_i32_12 = arith.constant 0 : i32
    %16 = arith.cmpi ne, %15, %c0_i32_12 : i32
    scf.if %16 {
      %c0_13 = arith.constant 0 : index
      %c0_14 = arith.constant 0 : index
      %17 = vector.load %arg4[%c0_13, %c0_14] : memref<24x128xf32, #tpu.memory_space<vmem>>, vector<24x128xf32>
      %c0_15 = arith.constant 0 : index
      %c0_16 = arith.constant 0 : index
      %18 = vector.load %arg5[%c0_15, %c0_16] : memref<1x128xf32, #tpu.memory_space<vmem>>, vector<1x128xf32>
      %cst_17 = arith.constant dense<0.000000e+00> : vector<128xf32>
      %19 = vector.multi_reduction <add>, %17, %cst_17 [0] : vector<24x128xf32> to vector<128xf32>
      %20 = vector.shape_cast %19 : vector<128xf32> to vector<1x128xf32>
      %21 = arith.addf %18, %20 : vector<1x128xf32>
      %c0_18 = arith.constant 0 : index
      %c0_19 = arith.constant 0 : index
      %22 = vector.load %arg5[%c0_18, %c0_19] : memref<1x128xf32, #tpu.memory_space<vmem>>, vector<1x128xf32>
      tpu.vector_store %arg5[%c0_18, %c0_19], %21 {strides = array<i32>} : memref<1x128xf32, #tpu.memory_space<vmem>>, vector<1x128xf32>,
      %c0_20 = arith.constant 0 : index
      %c0_21 = arith.constant 0 : index
      %23 = vector.load %arg6[%c0_20, %c0_21] : memref<1x128xf32, #tpu.memory_space<vmem>>, vector<1x128xf32>
      %24 = arith.mulf %17, %17 : vector<24x128xf32>
      %cst_22 = arith.constant dense<0.000000e+00> : vector<128xf32>
      %25 = vector.multi_reduction <add>, %24, %cst_22 [0] : vector<24x128xf32> to vector<128xf32>
      %26 = vector.shape_cast %25 : vector<128xf32> to vector<1x128xf32>
      %27 = arith.addf %23, %26 : vector<1x128xf32>
      %c0_23 = arith.constant 0 : index
      %c0_24 = arith.constant 0 : index
      %28 = vector.load %arg6[%c0_23, %c0_24] : memref<1x128xf32, #tpu.memory_space<vmem>>, vector<1x128xf32>
      tpu.vector_store %arg6[%c0_23, %c0_24], %27 {strides = array<i32>} : memref<1x128xf32, #tpu.memory_space<vmem>>, vector<1x128xf32>,
    } else {
    }
    return
  }
  func.func @transform_0(%arg0: i32, %arg1: i32) -> (i32, i32) {
    %c0_i32 = arith.constant 0 : i32
    return %arg0, %arg1 : i32, i32
  }
  func.func @transform_1(%arg0: i32, %arg1: i32) -> (i32, i32) {
    %c0_i32 = arith.constant 0 : i32
    %c0_i32_0 = arith.constant 0 : i32
    return %arg1, %c0_i32 : i32, i32
  }
  func.func @transform_2(%arg0: i32, %arg1: i32) -> (i32, i32) {
    %c0_i32 = arith.constant 0 : i32
    %c0_i32_0 = arith.constant 0 : i32
    return %arg0, %c0_i32 : i32, i32
  }
  func.func @transform_3(%arg0: i32, %arg1: i32) -> (i32, i32) {
    %c0_i32 = arith.constant 0 : i32
    %c0_i32_0 = arith.constant 0 : i32
    %c0_i32_1 = arith.constant 0 : i32
    return %c0_i32, %c0_i32_0 : i32, i32
  }
  func.func @transform_4(%arg0: i32, %arg1: i32) -> (i32, i32) {
    %c0_i32 = arith.constant 0 : i32
    %c0_i32_0 = arith.constant 0 : i32
    %c0_i32_1 = arith.constant 0 : i32
    return %c0_i32, %c0_i32_0 : i32, i32
  }
}

module attributes {stable_mosaic.version = 11 : i64} {
  func.func @_matmul_stats_kernel(%arg0: i32, %arg1: i32, %arg2: memref<32x512xbf16, #tpu.memory_space<vmem>>, %arg3: memref<512x128xbf16, #tpu.memory_space<vmem>>, %arg4: memref<32x128xf32, #tpu.memory_space<vmem>>, %arg5: memref<1x128xf32, #tpu.memory_space<vmem>>, %arg6: memref<1x128xf32, #tpu.memory_space<vmem>>) attributes {dimension_semantics = [#tpu.dimension_semantics<arbitrary>, #tpu.dimension_semantics<arbitrary>], iteration_bounds = array<i64: 1, 1>, scalar_prefetch = 0 : i64, scratch_operands = 0 : i64, tpu.core_type = #tpu.core_type<tc>, window_params = [{transform_indices = @transform_0, window_bounds = array<i64: 32, 512>}, {transform_indices = @transform_1, window_bounds = array<i64: 512, 128>}, {transform_indices = @transform_2, window_bounds = array<i64: 32, 128>}, {pipeline_mode = #tpu.pipeline_mode<synchronous>, transform_indices = @transform_3, window_bounds = array<i64: 1, 128>}, {pipeline_mode = #tpu.pipeline_mode<synchronous>, transform_indices = @transform_4, window_bounds = array<i64: 1, 128>}]} {
    %c0_i32 = arith.constant 0 : i32
    %0 = arith.cmpi eq, %arg0, %c0_i32 : i32
    %c0_i32_0 = arith.constant 0 : i32
    %1 = arith.cmpi eq, %arg1, %c0_i32_0 : i32
    %2 = arith.andi %0, %1 : i1
    %3 = arith.extui %2 : i1 to i32
    %c0_i32_1 = arith.constant 0 : i32
    %4 = arith.cmpi ne, %3, %c0_i32_1 : i32
    scf.if %4 {
      %cst_13 = arith.constant 0.000000e+00 : f32
      %17 = vector.broadcast %cst_13 : f32 to vector<1x128xf32>
      %c0_14 = arith.constant 0 : index
      %c0_15 = arith.constant 0 : index
      %18 = vector.load %arg5[%c0_14, %c0_15] : memref<1x128xf32, #tpu.memory_space<vmem>>, vector<1x128xf32>
      tpu.vector_store %arg5[%c0_14, %c0_15], %17 {strides = array<i32>} : memref<1x128xf32, #tpu.memory_space<vmem>>, vector<1x128xf32>,
      %cst_16 = arith.constant 0.000000e+00 : f32
      %19 = vector.broadcast %cst_16 : f32 to vector<1x128xf32>
      %c0_17 = arith.constant 0 : index
      %c0_18 = arith.constant 0 : index
      %20 = vector.load %arg6[%c0_17, %c0_18] : memref<1x128xf32, #tpu.memory_space<vmem>>, vector<1x128xf32>
      tpu.vector_store %arg6[%c0_17, %c0_18], %19 {strides = array<i32>} : memref<1x128xf32, #tpu.memory_space<vmem>>, vector<1x128xf32>,
    } else {
    }
    %c0_i32_2 = arith.constant 0 : i32
    %5 = arith.cmpi eq, %arg1, %c0_i32_2 : i32
    %6 = arith.extui %5 : i1 to i32
    %c0_i32_3 = arith.constant 0 : i32
    %7 = arith.cmpi ne, %6, %c0_i32_3 : i32
    scf.if %7 {
      %cst_13 = arith.constant 0.000000e+00 : f32
      %17 = vector.broadcast %cst_13 : f32 to vector<32x128xf32>
      %c0_14 = arith.constant 0 : index
      %c0_15 = arith.constant 0 : index
      %18 = vector.load %arg4[%c0_14, %c0_15] : memref<32x128xf32, #tpu.memory_space<vmem>>, vector<32x128xf32>
      tpu.vector_store %arg4[%c0_14, %c0_15], %17 {strides = array<i32>} : memref<32x128xf32, #tpu.memory_space<vmem>>, vector<32x128xf32>,
    } else {
    }
    %c0 = arith.constant 0 : index
    %c0_4 = arith.constant 0 : index
    %8 = vector.load %arg4[%c0, %c0_4] : memref<32x128xf32, #tpu.memory_space<vmem>>, vector<32x128xf32>
    %c0_5 = arith.constant 0 : index
    %c0_6 = arith.constant 0 : index
    %9 = vector.load %arg2[%c0_5, %c0_6] : memref<32x512xbf16, #tpu.memory_space<vmem>>, vector<32x512xbf16>
    %c0_7 = arith.constant 0 : index
    %c0_8 = arith.constant 0 : index
    %10 = vector.load %arg3[%c0_7, %c0_8] : memref<512x128xbf16, #tpu.memory_space<vmem>>, vector<512x128xbf16>
    %cst = arith.constant dense<0.000000e+00> : vector<32x128xf32>
    %11 = tpu.matmul %9, %10, %cst {dimension_numbers = #tpu.dot_dimension_numbers<[1], [0], [0], [1], [0, 0, 1, 1], [], []>} : vector<32x512xbf16>, vector<512x128xbf16>, vector<32x128xf32> -> vector<32x128xf32>
    %12 = arith.addf %8, %11 : vector<32x128xf32>
    %c0_9 = arith.constant 0 : index
    %c0_10 = arith.constant 0 : index
    %13 = vector.load %arg4[%c0_9, %c0_10] : memref<32x128xf32, #tpu.memory_space<vmem>>, vector<32x128xf32>
    tpu.vector_store %arg4[%c0_9, %c0_10], %12 {strides = array<i32>} : memref<32x128xf32, #tpu.memory_space<vmem>>, vector<32x128xf32>,
    %c0_i32_11 = arith.constant 0 : i32
    %14 = arith.cmpi eq, %arg1, %c0_i32_11 : i32
    %15 = arith.extui %14 : i1 to i32
    %c0_i32_12 = arith.constant 0 : i32
    %16 = arith.cmpi ne, %15, %c0_i32_12 : i32
    scf.if %16 {
      %c0_13 = arith.constant 0 : index
      %c0_14 = arith.constant 0 : index
      %17 = vector.load %arg4[%c0_13, %c0_14] : memref<32x128xf32, #tpu.memory_space<vmem>>, vector<32x128xf32>
      %c0_15 = arith.constant 0 : index
      %c0_16 = arith.constant 0 : index
      %18 = vector.load %arg5[%c0_15, %c0_16] : memref<1x128xf32, #tpu.memory_space<vmem>>, vector<1x128xf32>
      %cst_17 = arith.constant dense<0.000000e+00> : vector<128xf32>
      %19 = vector.multi_reduction <add>, %17, %cst_17 [0] : vector<32x128xf32> to vector<128xf32>
      %20 = vector.shape_cast %19 : vector<128xf32> to vector<1x128xf32>
      %21 = arith.addf %18, %20 : vector<1x128xf32>
      %c0_18 = arith.constant 0 : index
      %c0_19 = arith.constant 0 : index
      %22 = vector.load %arg5[%c0_18, %c0_19] : memref<1x128xf32, #tpu.memory_space<vmem>>, vector<1x128xf32>
      tpu.vector_store %arg5[%c0_18, %c0_19], %21 {strides = array<i32>} : memref<1x128xf32, #tpu.memory_space<vmem>>, vector<1x128xf32>,
      %c0_20 = arith.constant 0 : index
      %c0_21 = arith.constant 0 : index
      %23 = vector.load %arg6[%c0_20, %c0_21] : memref<1x128xf32, #tpu.memory_space<vmem>>, vector<1x128xf32>
      %24 = arith.mulf %17, %17 : vector<32x128xf32>
      %cst_22 = arith.constant dense<0.000000e+00> : vector<128xf32>
      %25 = vector.multi_reduction <add>, %24, %cst_22 [0] : vector<32x128xf32> to vector<128xf32>
      %26 = vector.shape_cast %25 : vector<128xf32> to vector<1x128xf32>
      %27 = arith.addf %23, %26 : vector<1x128xf32>
      %c0_23 = arith.constant 0 : index
      %c0_24 = arith.constant 0 : index
      %28 = vector.load %arg6[%c0_23, %c0_24] : memref<1x128xf32, #tpu.memory_space<vmem>>, vector<1x128xf32>
      tpu.vector_store %arg6[%c0_23, %c0_24], %27 {strides = array<i32>} : memref<1x128xf32, #tpu.memory_space<vmem>>, vector<1x128xf32>,
    } else {
    }
    return
  }
  func.func @transform_0(%arg0: i32, %arg1: i32) -> (i32, i32) {
    %c0_i32 = arith.constant 0 : i32
    return %arg0, %arg1 : i32, i32
  }
  func.func @transform_1(%arg0: i32, %arg1: i32) -> (i32, i32) {
    %c0_i32 = arith.constant 0 : i32
    %c0_i32_0 = arith.constant 0 : i32
    return %arg1, %c0_i32 : i32, i32
  }
  func.func @transform_2(%arg0: i32, %arg1: i32) -> (i32, i32) {
    %c0_i32 = arith.constant 0 : i32
    %c0_i32_0 = arith.constant 0 : i32
    return %arg0, %c0_i32 : i32, i32
  }
  func.func @transform_3(%arg0: i32, %arg1: i32) -> (i32, i32) {
    %c0_i32 = arith.constant 0 : i32
    %c0_i32_0 = arith.constant 0 : i32
    %c0_i32_1 = arith.constant 0 : i32
    return %c0_i32, %c0_i32_0 : i32, i32
  }
  func.func @transform_4(%arg0: i32, %arg1: i32) -> (i32, i32) {
    %c0_i32 = arith.constant 0 : i32
    %c0_i32_0 = arith.constant 0 : i32
    %c0_i32_1 = arith.constant 0 : i32
    return %c0_i32, %c0_i32_0 : i32, i32
  }
}

module attributes {stable_mosaic.version = 11 : i64} {
  func.func @_bn_act_kernel(%arg0: i32, %arg1: memref<32x128xf32, #tpu.memory_space<vmem>>, %arg2: memref<1x128xf32, #tpu.memory_space<vmem>>, %arg3: memref<1x128xf32, #tpu.memory_space<vmem>>, %arg4: memref<32x128xbf16, #tpu.memory_space<vmem>>) attributes {dimension_semantics = [#tpu.dimension_semantics<parallel>], iteration_bounds = array<i64: 1>, scalar_prefetch = 0 : i64, scratch_operands = 0 : i64, tpu.core_type = #tpu.core_type<tc>, window_params = [{transform_indices = @transform_0, window_bounds = array<i64: 32, 128>}, {pipeline_mode = #tpu.pipeline_mode<synchronous>, transform_indices = @transform_1, window_bounds = array<i64: 1, 128>}, {pipeline_mode = #tpu.pipeline_mode<synchronous>, transform_indices = @transform_2, window_bounds = array<i64: 1, 128>}, {transform_indices = @transform_3, window_bounds = array<i64: 32, 128>}]} {
    %c0 = arith.constant 0 : index
    %c0_0 = arith.constant 0 : index
    %0 = vector.load %arg1[%c0, %c0_0] : memref<32x128xf32, #tpu.memory_space<vmem>>, vector<32x128xf32>
    %c0_1 = arith.constant 0 : index
    %c0_2 = arith.constant 0 : index
    %1 = vector.load %arg2[%c0_1, %c0_2] : memref<1x128xf32, #tpu.memory_space<vmem>>, vector<1x128xf32>
    %2 = vector.broadcast %1 : vector<1x128xf32> to vector<32x128xf32>
    %3 = arith.mulf %0, %2 : vector<32x128xf32>
    %c0_3 = arith.constant 0 : index
    %c0_4 = arith.constant 0 : index
    %4 = vector.load %arg3[%c0_3, %c0_4] : memref<1x128xf32, #tpu.memory_space<vmem>>, vector<1x128xf32>
    %5 = vector.broadcast %4 : vector<1x128xf32> to vector<32x128xf32>
    %6 = arith.addf %3, %5 : vector<32x128xf32>
    %cst = arith.constant 0.000000e+00 : f32
    %7 = vector.broadcast %cst : f32 to vector<32x128xf32>
    %8 = arith.cmpf ogt, %6, %7 : vector<32x128xf32>
    %cst_5 = arith.constant 2.000000e-01 : f32
    %9 = vector.broadcast %cst_5 : f32 to vector<32x128xf32>
    %10 = arith.mulf %9, %6 : vector<32x128xf32>
    %11 = arith.select %8, %6, %10 : vector<32x128xi1>, vector<32x128xf32>
    %12 = arith.truncf %11 : vector<32x128xf32> to vector<32x128xbf16>
    %c0_6 = arith.constant 0 : index
    %c0_7 = arith.constant 0 : index
    %13 = vector.load %arg4[%c0_6, %c0_7] : memref<32x128xbf16, #tpu.memory_space<vmem>>, vector<32x128xbf16>
    tpu.vector_store %arg4[%c0_6, %c0_7], %12 {strides = array<i32>} : memref<32x128xbf16, #tpu.memory_space<vmem>>, vector<32x128xbf16>,
    return
  }
  func.func @transform_0(%arg0: i32) -> (i32, i32) {
    %c0_i32 = arith.constant 0 : i32
    %c0_i32_0 = arith.constant 0 : i32
    return %arg0, %c0_i32 : i32, i32
  }
  func.func @transform_1(%arg0: i32) -> (i32, i32) {
    %c0_i32 = arith.constant 0 : i32
    %c0_i32_0 = arith.constant 0 : i32
    %c0_i32_1 = arith.constant 0 : i32
    return %c0_i32, %c0_i32_0 : i32, i32
  }
  func.func @transform_2(%arg0: i32) -> (i32, i32) {
    %c0_i32 = arith.constant 0 : i32
    %c0_i32_0 = arith.constant 0 : i32
    %c0_i32_1 = arith.constant 0 : i32
    return %c0_i32, %c0_i32_0 : i32, i32
  }
  func.func @transform_3(%arg0: i32) -> (i32, i32) {
    %c0_i32 = arith.constant 0 : i32
    %c0_i32_0 = arith.constant 0 : i32
    return %arg0, %c0_i32 : i32, i32
  }
}

module attributes {stable_mosaic.version = 11 : i64} {
  func.func @_matmul_bias_act_kernel(%arg0: i32, %arg1: i32, %arg2: memref<56x512xbf16, #tpu.memory_space<vmem>>, %arg3: memref<512x128xbf16, #tpu.memory_space<vmem>>, %arg4: memref<1x128xf32, #tpu.memory_space<vmem>>, %arg5: memref<56x128xf32, #tpu.memory_space<vmem>>, %arg6: memref<56x128xf32, #tpu.memory_space<vmem>>) attributes {dimension_semantics = [#tpu.dimension_semantics<parallel>, #tpu.dimension_semantics<arbitrary>], iteration_bounds = array<i64: 1, 2>, scalar_prefetch = 0 : i64, scratch_operands = 1 : i64, tpu.core_type = #tpu.core_type<tc>, window_params = [{transform_indices = @transform_0, window_bounds = array<i64: 56, 512>}, {transform_indices = @transform_1, window_bounds = array<i64: 512, 128>}, {pipeline_mode = #tpu.pipeline_mode<synchronous>, transform_indices = @transform_2, window_bounds = array<i64: 1, 128>}, {transform_indices = @transform_3, window_bounds = array<i64: 56, 128>}]} {
    %c0_i32 = arith.constant 0 : i32
    %0 = arith.cmpi eq, %arg1, %c0_i32 : i32
    %1 = arith.extui %0 : i1 to i32
    %c0_i32_0 = arith.constant 0 : i32
    %2 = arith.cmpi ne, %1, %c0_i32_0 : i32
    scf.if %2 {
      %cst_9 = arith.constant 0.000000e+00 : f32
      %12 = vector.broadcast %cst_9 : f32 to vector<56x128xf32>
      %c0_10 = arith.constant 0 : index
      %c0_11 = arith.constant 0 : index
      %13 = vector.load %arg6[%c0_10, %c0_11] : memref<56x128xf32, #tpu.memory_space<vmem>>, vector<56x128xf32>
      tpu.vector_store %arg6[%c0_10, %c0_11], %12 {strides = array<i32>} : memref<56x128xf32, #tpu.memory_space<vmem>>, vector<56x128xf32>,
    } else {
    }
    %c0 = arith.constant 0 : index
    %c0_1 = arith.constant 0 : index
    %3 = vector.load %arg6[%c0, %c0_1] : memref<56x128xf32, #tpu.memory_space<vmem>>, vector<56x128xf32>
    %c0_2 = arith.constant 0 : index
    %c0_3 = arith.constant 0 : index
    %4 = vector.load %arg2[%c0_2, %c0_3] : memref<56x512xbf16, #tpu.memory_space<vmem>>, vector<56x512xbf16>
    %c0_4 = arith.constant 0 : index
    %c0_5 = arith.constant 0 : index
    %5 = vector.load %arg3[%c0_4, %c0_5] : memref<512x128xbf16, #tpu.memory_space<vmem>>, vector<512x128xbf16>
    %cst = arith.constant dense<0.000000e+00> : vector<56x128xf32>
    %6 = tpu.matmul %4, %5, %cst {dimension_numbers = #tpu.dot_dimension_numbers<[1], [0], [0], [1], [0, 0, 1, 1], [], []>} : vector<56x512xbf16>, vector<512x128xbf16>, vector<56x128xf32> -> vector<56x128xf32>
    %7 = arith.addf %3, %6 : vector<56x128xf32>
    %c0_6 = arith.constant 0 : index
    %c0_7 = arith.constant 0 : index
    %8 = vector.load %arg6[%c0_6, %c0_7] : memref<56x128xf32, #tpu.memory_space<vmem>>, vector<56x128xf32>
    tpu.vector_store %arg6[%c0_6, %c0_7], %7 {strides = array<i32>} : memref<56x128xf32, #tpu.memory_space<vmem>>, vector<56x128xf32>,
    %c1_i32 = arith.constant 1 : i32
    %9 = arith.cmpi eq, %arg1, %c1_i32 : i32
    %10 = arith.extui %9 : i1 to i32
    %c0_i32_8 = arith.constant 0 : i32
    %11 = arith.cmpi ne, %10, %c0_i32_8 : i32
    scf.if %11 {
      %c0_9 = arith.constant 0 : index
      %c0_10 = arith.constant 0 : index
      %12 = vector.load %arg6[%c0_9, %c0_10] : memref<56x128xf32, #tpu.memory_space<vmem>>, vector<56x128xf32>
      %c0_11 = arith.constant 0 : index
      %c0_12 = arith.constant 0 : index
      %13 = vector.load %arg4[%c0_11, %c0_12] : memref<1x128xf32, #tpu.memory_space<vmem>>, vector<1x128xf32>
      %14 = vector.broadcast %13 : vector<1x128xf32> to vector<56x128xf32>
      %15 = arith.addf %12, %14 : vector<56x128xf32>
      %c0_13 = arith.constant 0 : index
      %c0_14 = arith.constant 0 : index
      %16 = vector.load %arg5[%c0_13, %c0_14] : memref<56x128xf32, #tpu.memory_space<vmem>>, vector<56x128xf32>
      tpu.vector_store %arg5[%c0_13, %c0_14], %15 {strides = array<i32>} : memref<56x128xf32, #tpu.memory_space<vmem>>, vector<56x128xf32>,
    } else {
    }
    return
  }
  func.func @transform_0(%arg0: i32, %arg1: i32) -> (i32, i32) {
    %c0_i32 = arith.constant 0 : i32
    return %arg0, %arg1 : i32, i32
  }
  func.func @transform_1(%arg0: i32, %arg1: i32) -> (i32, i32) {
    %c0_i32 = arith.constant 0 : i32
    %c0_i32_0 = arith.constant 0 : i32
    return %arg1, %c0_i32 : i32, i32
  }
  func.func @transform_2(%arg0: i32, %arg1: i32) -> (i32, i32) {
    %c0_i32 = arith.constant 0 : i32
    %c0_i32_0 = arith.constant 0 : i32
    %c0_i32_1 = arith.constant 0 : i32
    return %c0_i32, %c0_i32_0 : i32, i32
  }
  func.func @transform_3(%arg0: i32, %arg1: i32) -> (i32, i32) {
    %c0_i32 = arith.constant 0 : i32
    %c0_i32_0 = arith.constant 0 : i32
    return %arg0, %c0_i32 : i32, i32
  }
}

</mosaic_0001>

<bundles_post_ra>
// kernel: _lambda_.8
= control target key start
LH: loop header
LB: loop body
LE: loop exit
PB: predicated region body
PF: predicated region fallthrough
CT: control target
= control target key end

     0   :  { %v834_v0 = vmov 0.0   ;;  %vm835_vm0 = vmmov 0   ;;  %s1010_s1 = inlined_call_operand.vmem [shape: bf16[128,128], index: 1, kind: input, shape index: {}]   ;;  %s1011_s0 = inlined_call_operand.vmem [shape: bf16[168,128], index: 0, kind: input, shape index: {}]   ;;  %s1012_s2 = inlined_call_operand.vmem [shape: f32[1,128], index: 2, kind: input, shape index: {}]   ;;  %s1013_s3 = inlined_call_operand.vmem [shape: bf16[168,128], index: 3, kind: output, shape index: {}]  }
   0x1   :  { %737 = vmatprep.subr.bf16.mxu0 %v834_v0  ;;  %v815_v1 = vld [vmem:[%s1010_s1] sm:$0xff]   ;;  %797 = vmatprep.subr.bf16.mxu1 %v834_v0  ;;  %v816_v2 = vld [vmem:[%s1010_s1 + $0x8] sm:$0xff]   ;;  %v817_v3 = vld [vmem:[%s1010_s1 + $0x10] sm:$0xff]  }
   0x2   :  { %753 = vmatprep.mubr.msk.bf16.mxu0 %vm835_vm0, %v834_v0  ;;  %777 = vmatprep.mubr.msk.bf16.mxu1 %vm835_vm0, %v834_v0  ;;  %v818_v4 = vld [vmem:[%s1010_s1 + $0x18] sm:$0xff]   ;;  %v819_v5 = vld [vmem:[%s1010_s1 + $0x20] sm:$0xff]   ;;  %v820_v6 = vld [vmem:[%s1010_s1 + $0x28] sm:$0xff]  }
   0x3   :  { %738 = vmatpush3.bf16.msra.mxu0 %v815_v1  ;;  %805 = vmatpush3.bf16.msra.mxu1 %v815_v1  ;;  %v821_v7 = vld [vmem:[%s1010_s1 + $0x30] sm:$0xff]   ;;  %v822_v8 = vld [vmem:[%s1010_s1 + $0x38] sm:$0xff]   ;;  %v823_v9 = vld [vmem:[%s1011_s0] sm:$0xff]  }
   0x4   :  { %739 = vmatprep.subr.bf16.mxu0 %v834_v0  ;;  %798 = vmatprep.subr.bf16.mxu1 %v834_v0  ;;  %v824_v10 = vld [vmem:[%s1011_s0 + $0x30] sm:$0xff]   ;;  %v825_v11 = vld [vmem:[%s1011_s0 + $0x8] sm:$0xff]   ;;  %v826_v12 = vld [vmem:[%s1011_s0 + $0x38] sm:$0xff]  }
   0x5   :  { %v827_v13 = vld [vmem:[%s1011_s0 + $0x10] sm:$0xff]   ;;  %v828_v14 = vld [vmem:[%s1011_s0 + $0x40] sm:$0xff]   ;;  %v829_v15 = vld [vmem:[%s1011_s0 + $0x18] sm:$0xff]  }
   0x6   :  { %v830_v16 = vld [vmem:[%s1011_s0 + $0x48] sm:$0xff]   ;;  %v831_v17 = vld [vmem:[%s1011_s0 + $0x20] sm:$0xff]   ;;  %v832_v18 = vld [vmem:[%s1011_s0 + $0x50] ss:$0 sps:$4 sm:$0xff]  }
   0x7   :  { %740 = vmatpush3.bf16.msra.mxu0 %v816_v2  ;;  %806 = vmatpush3.bf16.msra.mxu1 %v816_v2  ;;  %v833_v19 = vld [vmem:[%s1011_s0 + $0x28] sm:$0xff]   ;;  %v954_v20 = vld [vmem:[%s1012_s2] ss:$0 sm:$0xff] }
   0x8   :  { %741 = vmatprep.subr.bf16.mxu0 %v834_v0  ;;  %799 = vmatprep.subr.bf16.mxu1 %v834_v0 }
   0xb   :  { %742 = vmatpush3.bf16.msra.mxu0 %v817_v3  ;;  %807 = vmatpush3.bf16.msra.mxu1 %v817_v3 }
   0xc   :  { %743 = vmatprep.subr.bf16.mxu0 %v834_v0  ;;  %800 = vmatprep.subr.bf16.mxu1 %v834_v0 }
   0xf   :  { %744 = vmatpush3.bf16.msra.mxu0 %v818_v4  ;;  %808 = vmatpush3.bf16.msra.mxu1 %v818_v4 }
  0x10   :  { %745 = vmatprep.subr.bf16.mxu0 %v834_v0  ;;  %801 = vmatprep.subr.bf16.mxu1 %v834_v0 }
  0x13   :  { %746 = vmatpush3.bf16.msra.mxu0 %v819_v5  ;;  %809 = vmatpush3.bf16.msra.mxu1 %v819_v5 }
  0x14   :  { %747 = vmatprep.subr.bf16.mxu0 %v834_v0  ;;  %802 = vmatprep.subr.bf16.mxu1 %v834_v0 }
  0x17   :  { %748 = vmatpush3.bf16.msra.mxu0 %v820_v6  ;;  %810 = vmatpush3.bf16.msra.mxu1 %v820_v6 }
  0x18   :  { %749 = vmatprep.subr.bf16.mxu0 %v834_v0  ;;  %803 = vmatprep.subr.bf16.mxu1 %v834_v0 }
  0x1b   :  { %750 = vmatpush3.bf16.msra.mxu0 %v821_v7  ;;  %811 = vmatpush3.bf16.msra.mxu1 %v821_v7 }
  0x1c   :  { %751 = vmatprep.subr.bf16.mxu0 %v834_v0  ;;  %804 = vmatprep.subr.bf16.mxu1 %v834_v0 }
  0x1f   :  { %752 = vmatpush3.bf16.msra.mxu0 %v822_v8  ;;  %812 = vmatpush3.bf16.msra.mxu1 %v822_v8 }
  0x22   :  { %754 = vmatmul.mubr.bf16.vlgmr.msra.gmra.mrb[0].mxu0 %v823_v9  ;;  %778 = vmatmul.mubr.bf16.vlgmr.msra.gmra.mrb[0].mxu1 %v824_v10 }
  0x23   :  { %757 = vmatprep.mubr.msk.bf16.mxu0 %vm835_vm0, %v834_v0  ;;  %781 = vmatprep.mubr.msk.bf16.mxu1 %vm835_vm0, %v834_v0 }
  0x2a   :  { %758 = vmatmul.mubr.bf16.gmra.mrb[4].mxu0 %v825_v11  ;;  %782 = vmatmul.mubr.bf16.gmra.mrb[4].mxu1 %v826_v12 }
  0x2b   :  { %761 = vmatprep.mubr.msk.bf16.mxu0 %vm835_vm0, %v834_v0  ;;  %785 = vmatprep.mubr.msk.bf16.mxu1 %vm835_vm0, %v834_v0 }
  0x32   :  { %762 = vmatmul.mubr.bf16.gmra.mrb[8].mxu0 %v827_v13  ;;  %786 = vmatmul.mubr.bf16.gmra.mrb[8].mxu1 %v828_v14 }
  0x33   :  { %765 = vmatprep.mubr.msk.bf16.mxu0 %vm835_vm0, %v834_v0  ;;  %789 = vmatprep.mubr.msk.bf16.mxu1 %vm835_vm0, %v834_v0 }
  0x3a   :  { %766 = vmatmul.mubr.bf16.gmra.mrb[12].mxu0 %v829_v15  ;;  %790 = vmatmul.mubr.bf16.gmra.mrb[12].mxu1 %v830_v16 }
  0x3b   :  { %769 = vmatprep.mubr.msk.bf16.mxu0 %vm835_vm0, %v834_v0  ;;  %793 = vmatprep.mubr.msk.bf16.mxu1 %vm835_vm0, %v834_v0 }
  0x42   :  { %770 = vmatmul.mubr.bf16.gmra.mrb[16].mxu0 %v831_v17  ;;  %794 = vmatmul.mubr.bf16.gmra.mrb[16].mxu1 %v832_v18 }
  0x43   :  { %773 = vmatprep.mubr.msk.bf16.mxu0 %vm835_vm0, %v834_v0 }
  0x4a   :  { %774 = vmatmul.mubr.bf16.gmra.mrb[20].mxu0 %v833_v19 }
  0xf5   :  { %v244_v21 = vpop.f32.mrb[0].mxu0  ;;  %v292_v22 = vpop.f32.mrb[0].mxu1 }
  0xf6   :  { %v403_v23 = vadd.f32 %v954_v20, %v244_v21  ;;  %v755_v24 = vpop.f32.mrb[1].mxu0  ;;  %v415_v25 = vadd.f32 %v954_v20, %v292_v22  ;;  %v779_v26 = vpop.f32.mrb[1].mxu1 }
  0xf7   :  { %v247_v27 = vpop.f32.mrb[2].mxu0  ;;  %v295_v28 = vpop.f32.mrb[2].mxu1 }
  0xf8   :  { %v445_v29 = vmul.f32 0.2, %v403_v23  ;;  %v404_v30 = vadd.f32 %v954_v20, %v247_v27  ;;  %v756_v31 = vpop.f32.mrb[3].mxu0  ;;  %vm436_vm1 = vcmp.gt.f32.partialorder %v415_v25, 0.0  ;;  %v780_v32 = vpop.f32.mrb[3].mxu1  ;;  %vm424_vm2 = vcmp.gt.f32.partialorder %v403_v23, 0.0 }
  0xf9   :  { %v457_v33 = vmul.f32 0.2, %v415_v25  ;;  %v416_v34 = vadd.f32 %v954_v20, %v295_v28 }
  0xfa   :  { %vm425_vm3 = vcmp.gt.f32.partialorder %v404_v30, 0.0  ;;  %v446_v35 = vmul.f32 0.2, %v404_v30  ;;  %v466_v38 = vsel %vm424_vm2, %v403_v23, %v445_v29 }
  0xfb   :  { %v478_v36 = vsel %vm436_vm1, %v415_v25, %v457_v33  ;;  %vm437_vm4 = vcmp.gt.f32.partialorder %v416_v34, 0.0  ;;  %v458_v37 = vmul.f32 0.2, %v416_v34 }
  0xfc   :  { %v467_v39 = vsel %vm425_vm3, %v404_v30, %v446_v35 }
  0xfd   :  { %v662_v40 = vpack.c.bf16 %v467_v39, %v466_v38  ;;  %v252_v41 = vpop.f32.mrb[4].mxu0  ;;  %v479_v42 = vsel %vm437_vm4, %v416_v34, %v458_v37  ;;  %v300_v43 = vpop.f32.mrb[4].mxu1 }
  0xfe   :  { %v405_v44 = vadd.f32 %v954_v20, %v252_v41  ;;  %v692_v45 = vpack.c.bf16 %v479_v42, %v478_v36  ;;  %v759_v46 = vpop.f32.mrb[5].mxu0  ;;  %v417_v47 = vadd.f32 %v954_v20, %v300_v43  ;;  %v783_v48 = vpop.f32.mrb[5].mxu1 }
  0xff   :  { %663 = vst [vmem:[%s1013_s3] sm:$0xff] %v662_v40   ;;  %v255_v49 = vpop.f32.mrb[6].mxu0  ;;  %v303_v50 = vpop.f32.mrb[6].mxu1 }
 0x100   :  { %v447_v51 = vmul.f32 0.2, %v405_v44  ;;  %714 = vst [vmem:[%s1013_s3 + $0x30] sm:$0xff] %v692_v45   ;;  %v406_v52 = vadd.f32 %v954_v20, %v255_v49  ;;  %v760_v53 = vpop.f32.mrb[7].mxu0  ;;  %vm438_vm5 = vcmp.gt.f32.partialorder %v417_v47, 0.0  ;;  %v784_v54 = vpop.f32.mrb[7].mxu1  ;;  %v418_v56 = vadd.f32 %v954_v20, %v303_v50 }
 0x101   :  { %vm426_vm6 = vcmp.gt.f32.partialorder %v405_v44, 0.0  ;;  %v459_v55 = vmul.f32 0.2, %v417_v47 }
 0x102   :  { %vm427_vm7 = vcmp.gt.f32.partialorder %v406_v52, 0.0  ;;  %v448_v57 = vmul.f32 0.2, %v406_v52  ;;  %vm439_vm8 = vcmp.gt.f32.partialorder %v418_v56, 0.0  ;;  %v460_v59 = vmul.f32 0.2, %v418_v56 }
 0x103   :  { %v480_v58 = vsel %vm438_vm5, %v417_v47, %v459_v55  ;;  %v468_v60 = vsel %vm426_vm6, %v405_v44, %v447_v51 }
 0x104   :  { %v469_v61 = vsel %vm427_vm7, %v406_v52, %v448_v57  ;;  %v481_v0 = vsel %vm439_vm8, %v418_v56, %v460_v59 }
 0x105   :  { %v667_v62 = vpack.c.bf16 %v469_v61, %v468_v60  ;;  %v260_v63 = vpop.f32.mrb[8].mxu0  ;;  %v308_v1 = vpop.f32.mrb[8].mxu1  ;;  %v697_v3 = vpack.c.bf16 %v481_v0, %v480_v58 }
 0x106   :  { %v407_v2 = vadd.f32 %v954_v20, %v260_v63  ;;  %v763_v4 = vpop.f32.mrb[9].mxu0  ;;  %v419_v5 = vadd.f32 %v954_v20, %v308_v1  ;;  %v787_v6 = vpop.f32.mrb[9].mxu1 }
 0x107   :  { %709 = vst [vmem:[%s1013_s3 + $0x8] sm:$0xff] %v667_v62   ;;  %v263_v7 = vpop.f32.mrb[10].mxu0  ;;  %v311_v8 = vpop.f32.mrb[10].mxu1  ;;  %715 = vst [vmem:[%s1013_s3 + $0x38] sm:$0xff] %v697_v3  }
 0x108   :  { %v449_v9 = vmul.f32 0.2, %v407_v2  ;;  %v408_v10 = vadd.f32 %v954_v20, %v263_v7  ;;  %v764_v11 = vpop.f32.mrb[11].mxu0  ;;  %vm440_vm9 = vcmp.gt.f32.partialorder %v419_v5, 0.0  ;;  %v788_v12 = vpop.f32.mrb[11].mxu1  ;;  %vm428_vm10 = vcmp.gt.f32.partialorder %v407_v2, 0.0 }
 0x109   :  { %v461_v13 = vmul.f32 0.2, %v419_v5  ;;  %v420_v14 = vadd.f32 %v954_v20, %v311_v8 }
 0x10a   :  { %vm429_vm11 = vcmp.gt.f32.partialorder %v408_v10, 0.0  ;;  %v450_v15 = vmul.f32 0.2, %v408_v10  ;;  %v470_v18 = vsel %vm428_vm10, %v407_v2, %v449_v9 }
 0x10b   :  { %v482_v16 = vsel %vm440_vm9, %v419_v5, %v461_v13  ;;  %vm441_vm12 = vcmp.gt.f32.partialorder %v420_v14, 0.0  ;;  %v462_v17 = vmul.f32 0.2, %v420_v14 }
 0x10c   :  { %v471_v19 = vsel %vm429_vm11, %v408_v10, %v450_v15 }
 0x10d   :  { %v672_v21 = vpack.c.bf16 %v471_v19, %v470_v18  ;;  %v268_v22 = vpop.f32.mrb[12].mxu0  ;;  %v483_v23 = vsel %vm441_vm12, %v420_v14, %v462_v17  ;;  %v316_v24 = vpop.f32.mrb[12].mxu1 }
 0x10e   :  { %v409_v25 = vadd.f32 %v954_v20, %v268_v22  ;;  %v702_v26 = vpack.c.bf16 %v483_v23, %v482_v16  ;;  %v767_v27 = vpop.f32.mrb[13].mxu0  ;;  %v421_v28 = vadd.f32 %v954_v20, %v316_v24  ;;  %v791_v29 = vpop.f32.mrb[13].mxu1 }
 0x10f   :  { %710 = vst [vmem:[%s1013_s3 + $0x10] sm:$0xff] %v672_v21   ;;  %v271_v30 = vpop.f32.mrb[14].mxu0  ;;  %v319_v31 = vpop.f32.mrb[14].mxu1 }
 0x110   :  { %v451_v32 = vmul.f32 0.2, %v409_v25  ;;  %716 = vst [vmem:[%s1013_s3 + $0x40] sm:$0xff] %v702_v26   ;;  %v410_v33 = vadd.f32 %v954_v20, %v271_v30  ;;  %v768_v34 = vpop.f32.mrb[15].mxu0  ;;  %vm442_vm13 = vcmp.gt.f32.partialorder %v421_v28, 0.0  ;;  %v792_v35 = vpop.f32.mrb[15].mxu1  ;;  %v422_v37 = vadd.f32 %v954_v20, %v319_v31 }
 0x111   :  { %vm430_vm14 = vcmp.gt.f32.partialorder %v409_v25, 0.0  ;;  %v463_v36 = vmul.f32 0.2, %v421_v28 }
 0x112   :  { %vm431_vm15 = vcmp.gt.f32.partialorder %v410_v33, 0.0  ;;  %v452_v38 = vmul.f32 0.2, %v410_v33  ;;  %vm443_vm0 = vcmp.gt.f32.partialorder %v422_v37, 0.0  ;;  %v464_v40 = vmul.f32 0.2, %v422_v37 }
 0x113   :  { %v484_v39 = vsel %vm442_vm13, %v421_v28, %v463_v36  ;;  %v472_v41 = vsel %vm430_vm14, %v409_v25, %v451_v32 }
 0x114   :  { %v473_v42 = vsel %vm431_vm15, %v410_v33, %v452_v38  ;;  %v485_v45 = vsel %vm443_vm0, %v422_v37, %v464_v40 }
 0x115   :  { %v677_v43 = vpack.c.bf16 %v473_v42, %v472_v41  ;;  %v276_v44 = vpop.f32.mrb[16].mxu0  ;;  %v324_v46 = vpop.f32.mrb[16].mxu1  ;;  %v707_v48 = vpack.c.bf16 %v485_v45, %v484_v39 }
 0x116   :  { %v411_v47 = vadd.f32 %v954_v20, %v276_v44  ;;  %v771_v49 = vpop.f32.mrb[17].mxu0  ;;  %v423_v50 = vadd.f32 %v954_v20, %v324_v46  ;;  %v795_v51 = vpop.f32.mrb[17].mxu1 }
 0x117   :  { %711 = vst [vmem:[%s1013_s3 + $0x18] sm:$0xff] %v677_v43   ;;  %v279_v52 = vpop.f32.mrb[18].mxu0  ;;  %v327_v53 = vpop.f32.mrb[18].mxu1  ;;  %717 = vst [vmem:[%s1013_s3 + $0x48] sm:$0xff] %v707_v48  }
 0x118   :  { %v453_v54 = vmul.f32 0.2, %v411_v47  ;;  %v412_v55 = vadd.f32 %v954_v20, %v279_v52  ;;  %v772_v56 = vpop.f32.mrb[19].mxu0  ;;  %vm444_vm1 = vcmp.gt.f32.partialorder %v423_v50, 0.0  ;;  %v796_v57 = vpop.f32.mrb[19].mxu1  ;;  %vm432_vm2 = vcmp.gt.f32.partialorder %v411_v47, 0.0 }
 0x119   :  { %v465_v58 = vmul.f32 0.2, %v423_v50 }
 0x11a   :  { %vm433_vm3 = vcmp.gt.f32.partialorder %v412_v55, 0.0  ;;  %v454_v59 = vmul.f32 0.2, %v412_v55  ;;  %v474_v61 = vsel %vm432_vm2, %v411_v47, %v453_v54 }
 0x11b   :  { %v486_v60 = vsel %vm444_vm1, %v423_v50, %v465_v58 }
 0x11c   :  { %v475_v62 = vsel %vm433_vm3, %v412_v55, %v454_v59  ;;  %v658_v63 = vpack.c.bf16 %v486_v60, %v486_v60 }
 0x11d   :  { %v682_v0 = vpack.c.bf16 %v475_v62, %v474_v61  ;;  %v284_v1 = vpop.f32.mrb[20].mxu0 }
 0x11e   :  { %592 = vst [vmem:[%s1013_s3 + $0x50] sm:$0xf] %v658_v63  ;;  %v413_v2 = vadd.f32 %v954_v20, %v284_v1  ;;  %v775_v3 = vpop.f32.mrb[21].mxu0 }
 0x11f   :  { %712 = vst [vmem:[%s1013_s3 + $0x20] sm:$0xff] %v682_v0   ;;  %v287_v4 = vpop.f32.mrb[22].mxu0 }
 0x120   :  { %v455_v5 = vmul.f32 0.2, %v413_v2  ;;  %v414_v6 = vadd.f32 %v954_v20, %v287_v4  ;;  %v776_v7 = vpop.f32.mrb[23].mxu0  ;;  %vm434_vm4 = vcmp.gt.f32.partialorder %v413_v2, 0.0 }
 0x122   :  { %vm435_vm5 = vcmp.gt.f32.partialorder %v414_v6, 0.0  ;;  %v456_v8 = vmul.f32 0.2, %v414_v6  ;;  %v476_v9 = vsel %vm434_vm4, %v413_v2, %v455_v5 }
 0x124   :  { %v477_v10 = vsel %vm435_vm5, %v414_v6, %v456_v8 }
 0x125   :  { %v687_v11 = vpack.c.bf16 %v477_v10, %v476_v9 }
 0x127   :  { %713 = vst [vmem:[%s1013_s3 + $0x28] sm:$0xff] %v687_v11  }

// kernel: _lambda_.10
= control target key start
LH: loop header
LB: loop body
LE: loop exit
PB: predicated region body
PF: predicated region fallthrough
CT: control target
= control target key end

     0   :  { %s202_s0 = inlined_call_operand.vmem [shape: f32[56,128], index: 0, kind: input, shape index: {}]   ;;  %s203_s1 = inlined_call_operand.vmem [shape: f32[1,128], index: 1, kind: input, shape index: {}]   ;;  %s204_s2 = inlined_call_operand.vmem [shape: f32[1,128], index: 2, kind: input, shape index: {}]   ;;  %s205_s3 = inlined_call_operand.vmem [shape: bf16[56,128], index: 3, kind: output, shape index: {}]  }
   0x1   :  { %v14_v0 = vld [vmem:[%s202_s0] sm:$0xff]  ;;  %v15_v1 = vld [vmem:[%s202_s0 + $0x8] sm:$0xff]  ;;  %v16_v6 = vld [vmem:[%s202_s0 + $0x10] sm:$0xff] }
   0x2   :  { %v110_v2 = vld [vmem:[%s203_s1] ss:$0 sm:$0xff]  ;;  %v17_v7 = vld [vmem:[%s202_s0 + $0x18] sm:$0xff]  ;;  %v19_v11 = vld [vmem:[%s202_s0 + $0x28] sm:$0xff] }
   0x3   :  { %v28_v3 = vmul.f32 %v110_v2, %v14_v0  ;;  %v29_v4 = vmul.f32 %v110_v2, %v15_v1  ;;  %v111_v5 = vld [vmem:[%s204_s2] ss:$0 sm:$0xff]  ;;  %v30_v8 = vmul.f32 %v110_v2, %v16_v6  ;;  %v31_v9 = vmul.f32 %v110_v2, %v17_v7  ;;  %v20_v12 = vld [vmem:[%s202_s0 + $0x30] sm:$0xff] }
   0x4   :  { %v18_v10 = vld [vmem:[%s202_s0 + $0x20] sm:$0xff]  ;;  %v33_v16 = vmul.f32 %v110_v2, %v19_v11  ;;  %v34_v19 = vmul.f32 %v110_v2, %v20_v12 }
   0x5   :  { %v42_v13 = vadd.f32 %v111_v5, %v28_v3  ;;  %v43_v14 = vadd.f32 %v111_v5, %v29_v4  ;;  %v32_v15 = vmul.f32 %v110_v2, %v18_v10  ;;  %v44_v17 = vadd.f32 %v111_v5, %v30_v8 }
   0x6   :  { %v45_v18 = vadd.f32 %v111_v5, %v31_v9  ;;  %v47_v27 = vadd.f32 %v111_v5, %v33_v16  ;;  %v48_v31 = vadd.f32 %v111_v5, %v34_v19 }
   0x7   :  { %vm49_vm0 = vcmp.gt.f32.partialorder %v42_v13, 0.0  ;;  %vm50_vm1 = vcmp.gt.f32.partialorder %v43_v14, 0.0  ;;  %v56_v20 = vmul.f32 0.2, %v42_v13  ;;  %v57_v21 = vmul.f32 0.2, %v43_v14 }
   0x8   :  { %vm51_vm2 = vcmp.gt.f32.partialorder %v44_v17, 0.0  ;;  %vm52_vm3 = vcmp.gt.f32.partialorder %v45_v18, 0.0  ;;  %v58_v22 = vmul.f32 0.2, %v44_v17  ;;  %v59_v23 = vmul.f32 0.2, %v45_v18 }
   0x9   :  { %v63_v24 = vsel %vm49_vm0, %v42_v13, %v56_v20  ;;  %v64_v25 = vsel %vm50_vm1, %v43_v14, %v57_v21  ;;  %v46_v26 = vadd.f32 %v111_v5, %v32_v15  ;;  %vm54_vm5 = vcmp.gt.f32.partialorder %v47_v27, 0.0 }
   0xa   :  { %v129_v28 = vpack.c.bf16 %v64_v25, %v63_v24  ;;  %v65_v29 = vsel %vm51_vm2, %v44_v17, %v58_v22  ;;  %v66_v30 = vsel %vm52_vm3, %v45_v18, %v59_v23  ;;  %v61_v34 = vmul.f32 0.2, %v47_v27 }
   0xb   :  { %v134_v32 = vpack.c.bf16 %v66_v30, %v65_v29  ;;  %vm53_vm4 = vcmp.gt.f32.partialorder %v46_v26, 0.0  ;;  %v60_v33 = vmul.f32 0.2, %v46_v26  ;;  %vm55_vm6 = vcmp.gt.f32.partialorder %v48_v31, 0.0 }
   0xc   :  { %130 = vst [vmem:[%s205_s3] sm:$0xff] %v129_v28   ;;  %v62_v35 = vmul.f32 0.2, %v48_v31  ;;  %v68_v37 = vsel %vm54_vm5, %v47_v27, %v61_v34 }
   0xd   :  { %141 = vst [vmem:[%s205_s3 + $0x8] sm:$0xff] %v134_v32   ;;  %v67_v36 = vsel %vm53_vm4, %v46_v26, %v60_v33 }
   0xe   :  { %v69_v38 = vsel %vm55_vm6, %v48_v31, %v62_v35  ;;  %v139_v39 = vpack.c.bf16 %v68_v37, %v67_v36 }
   0xf   :  { %v125_v40 = vpack.c.bf16 %v69_v38, %v69_v38 }
  0x10   :  { %142 = vst [vmem:[%s205_s3 + $0x10] sm:$0xff] %v139_v39  }
  0x11   :  { %105 = vst [vmem:[%s205_s3 + $0x18] sm:$0xf] %v125_v40 }

// kernel: _lambda_.9
= control target key start
LH: loop header
LB: loop body
LE: loop exit
PB: predicated region body
PF: predicated region fallthrough
CT: control target
= control target key end

     0   :  { %v347_v1 = vmov 0.0   ;;  %s448_s1 = inlined_call_operand.vmem [shape: bf16[128,128], index: 1, kind: input, shape index: {}]   ;;  %s449_s3 = inlined_call_operand.vmem [shape: f32[1,128], index: 3, kind: output, shape index: {1}]   ;;  %s450_s4 = inlined_call_operand.vmem [shape: f32[1,128], index: 4, kind: output, shape index: {2}]   ;;  %s451_s0 = inlined_call_operand.vmem [shape: bf16[56,128], index: 0, kind: input, shape index: {}]   ;;  %s452_s2 = inlined_call_operand.vmem [shape: f32[56,128], index: 2, kind: output, shape index: {0}]  }
   0x1   :  { %v335_v0 = vld [vmem:[%s448_s1] sm:$0xff]   ;;  %21 = vst [vmem:[%s449_s3] sm:$0x1] %v347_v1  ;;  %22 = vst [vmem:[%s450_s4] sm:$0x1] %v347_v1  ;;  %v336_v2 = vld [vmem:[%s448_s1 + $0x8] sm:$0xff]  }
   0x2   :  { %294 = vmatprep.subr.bf16.mxu0 %v335_v0  ;;  %318 = vmatprep.subr.bf16.mxu1 %v335_v0  ;;  %v337_v3 = vld [vmem:[%s448_s1 + $0x10] sm:$0xff]   ;;  %v338_v4 = vld [vmem:[%s448_s1 + $0x18] sm:$0xff]   ;;  %v343_v5 = vld [vmem:[%s451_s0] sm:$0xff]  }
   0x3   :  { %295 = vmatpush3.bf16.msra.mxu0 %v335_v0  ;;  %326 = vmatpush3.bf16.msra.mxu1 %v335_v0  ;;  %v345_v6 = vld [vmem:[%s451_s0 + $0x10] sm:$0xff]   ;;  %v339_v7 = vld [vmem:[%s448_s1 + $0x20] sm:$0xff]   ;;  %v340_v8 = vld [vmem:[%s448_s1 + $0x28] sm:$0xff]  }
   0x4   :  { %296 = vmatprep.subr.bf16.mxu0 %v336_v2  ;;  %319 = vmatprep.subr.bf16.mxu1 %v336_v2  ;;  %v341_v9 = vld [vmem:[%s448_s1 + $0x30] sm:$0xff]   ;;  %v342_v10 = vld [vmem:[%s448_s1 + $0x38] sm:$0xff]   ;;  %v344_v11 = vld [vmem:[%s451_s0 + $0x8] sm:$0xff]  }
   0x5   :  { %310 = vmatprep.mubr.bf16.mxu0 %v343_v5  ;;  %314 = vmatprep.mubr.bf16.mxu1 %v345_v6  ;;  %v346_v12 = vld [vmem:[%s451_s0 + $0x18] ss:$0 sps:$4 sm:$0xff]  }
   0x7   :  { %297 = vmatpush3.bf16.msra.mxu0 %v336_v2  ;;  %327 = vmatpush3.bf16.msra.mxu1 %v336_v2 }
   0x8   :  { %298 = vmatprep.subr.bf16.mxu0 %v337_v3  ;;  %320 = vmatprep.subr.bf16.mxu1 %v337_v3  ;;  %v221_v49 = vld [vmem:[%s449_s3] sm:$0x1] }
   0x9   :  { %v236_v52 = vld [vmem:[%s450_s4] sm:$0x1] }
   0xb   :  { %299 = vmatpush3.bf16.msra.mxu0 %v337_v3  ;;  %328 = vmatpush3.bf16.msra.mxu1 %v337_v3 }
   0xc   :  { %300 = vmatprep.subr.bf16.mxu0 %v338_v4  ;;  %321 = vmatprep.subr.bf16.mxu1 %v338_v4 }
   0xf   :  { %301 = vmatpush3.bf16.msra.mxu0 %v338_v4  ;;  %329 = vmatpush3.bf16.msra.mxu1 %v338_v4 }
  0x10   :  { %302 = vmatprep.subr.bf16.mxu0 %v339_v7  ;;  %322 = vmatprep.subr.bf16.mxu1 %v339_v7 }
  0x13   :  { %303 = vmatpush3.bf16.msra.mxu0 %v339_v7  ;;  %330 = vmatpush3.bf16.msra.mxu1 %v339_v7 }
  0x14   :  { %304 = vmatprep.subr.bf16.mxu0 %v340_v8  ;;  %323 = vmatprep.subr.bf16.mxu1 %v340_v8 }
  0x17   :  { %305 = vmatpush3.bf16.msra.mxu0 %v340_v8  ;;  %331 = vmatpush3.bf16.msra.mxu1 %v340_v8 }
  0x18   :  { %306 = vmatprep.subr.bf16.mxu0 %v341_v9  ;;  %324 = vmatprep.subr.bf16.mxu1 %v341_v9 }
  0x1b   :  { %307 = vmatpush3.bf16.msra.mxu0 %v341_v9  ;;  %332 = vmatpush3.bf16.msra.mxu1 %v341_v9 }
  0x1c   :  { %308 = vmatprep.subr.bf16.mxu0 %v342_v10  ;;  %325 = vmatprep.subr.bf16.mxu1 %v342_v10 }
  0x1f   :  { %309 = vmatpush3.bf16.msra.mxu0 %v342_v10  ;;  %333 = vmatpush3.bf16.msra.mxu1 %v342_v10 }
  0x22   :  { %311 = vmatmul.mubr.bf16.vlgmr.msra.gmra.mrb[0].mxu0 %v344_v11  ;;  %315 = vmatmul.mubr.bf16.vlgmr.msra.gmra.mrb[0].mxu1 %v346_v12 }
  0xf5   :  { %v312_v13 = vpop.f32.mrb[0].mxu0  ;;  %v316_v14 = vpop.f32.mrb[0].mxu1 }
  0xf6   :  { %v167_v15 = vpop.f32.mrb[1].mxu0  ;;  %v183_v16 = vpop.f32.mrb[1].mxu1  ;;  %206 = vst [vmem:[%s452_s2 + $0x10] sm:$0xff] %v312_v13  ;;  %210 = vst [vmem:[%s452_s2 + $0x30] sm:$0xff] %v316_v14  ;;  %v239_v24 = vmul.f32 %v312_v13, %v312_v13  ;;  %v243_v36 = vmul.f32 %v316_v14, %v316_v14 }
  0xf7   :  { %v313_v17 = vpop.f32.mrb[2].mxu0  ;;  %v317_v18 = vpop.f32.mrb[2].mxu1  ;;  %204 = vst [vmem:[%s452_s2] sm:$0xff] %v167_v15  ;;  %208 = vst [vmem:[%s452_s2 + $0x20] sm:$0xff] %v183_v16  ;;  %v237_v21 = vmul.f32 %v167_v15, %v167_v15  ;;  %v241_v30 = vmul.f32 %v183_v16, %v183_v16 }
  0xf8   :  { %v170_v19 = vpop.f32.mrb[3].mxu0  ;;  %v186_v20 = vpop.f32.mrb[3].mxu1  ;;  %207 = vst [vmem:[%s452_s2 + $0x18] sm:$0xff] %v313_v17  ;;  %v240_v27 = vmul.f32 %v313_v17, %v313_v17 }
  0xf9   :  { %205 = vst [vmem:[%s452_s2 + $0x8] sm:$0xff] %v170_v19  ;;  %v222_v22 = vadd.f32 %v170_v19, %v167_v15  ;;  %v238_v23 = vmul.f32 %v170_v19, %v170_v19  ;;  %209 = vst [vmem:[%s452_s2 + $0x28] sm:$0xff] %v186_v20  ;;  %v242_v35 = vmul.f32 %v186_v20, %v186_v20 }
  0xfb   :  { %v223_v25 = vadd.f32 %v312_v13, %v222_v22  ;;  %v244_v26 = vadd.f32 %v238_v23, %v237_v21 }
  0xfd   :  { %v245_v28 = vadd.f32 %v244_v26, %v239_v24  ;;  %v224_v29 = vadd.f32 %v313_v17, %v223_v25 }
  0xff   :  { %v225_v31 = vadd.f32 %v224_v29, %v183_v16  ;;  %v246_v32 = vadd.f32 %v245_v28, %v240_v27 }
 0x101   :  { %v247_v33 = vadd.f32 %v246_v32, %v241_v30  ;;  %v226_v34 = vadd.f32 %v225_v31, %v186_v20 }
 0x103   :  { %v227_v37 = vadd.f32 %v316_v14, %v226_v34  ;;  %v248_v38 = vadd.f32 %v247_v33, %v242_v35 }
 0x105   :  { %v228_v39 = vrot.slane %v227_v37, 4  ;;  %v249_v40 = vadd.f32 %v248_v38, %v243_v36 }
 0x107   :  { %v229_v41 = vadd.f32 %v228_v39, %v227_v37  ;;  %v250_v42 = vrot.slane %v249_v40, 4 }
 0x109   :  { %v230_v43 = vrot.slane %v229_v41, 2  ;;  %v251_v44 = vadd.f32 %v250_v42, %v249_v40 }
 0x10b   :  { %v231_v45 = vadd.f32 %v230_v43, %v229_v41  ;;  %v252_v46 = vrot.slane %v251_v44, 2 }
 0x10d   :  { %v232_v47 = vrot.slane %v231_v45, 1  ;;  %v253_v48 = vadd.f32 %v252_v46, %v251_v44 }
 0x10f   :  { %v233_v50 = vadd.f32 %v232_v47, %v231_v45  ;;  %v254_v51 = vrot.slane %v253_v48, 1 }
 0x111   :  { %v234_v53 = vadd.f32 %v233_v50, %v221_v49  ;;  %v255_v54 = vadd.f32 %v254_v51, %v253_v48 }
 0x113   :  { %235 = vst [vmem:[%s449_s3] sm:$0x1] %v234_v53  ;;  %v256_v55 = vadd.f32 %v255_v54, %v236_v52 }
 0x115   :  { %257 = vst [vmem:[%s450_s4] sm:$0x1] %v256_v55 }

// kernel: _lambda_.12
= control target key start
LH: loop header
LB: loop body
LE: loop exit
PB: predicated region body
PF: predicated region fallthrough
CT: control target
= control target key end

     0   :  { %s120_s0 = inlined_call_operand.vmem [shape: f32[24,128], index: 0, kind: input, shape index: {}]   ;;  %s121_s1 = inlined_call_operand.vmem [shape: f32[1,128], index: 1, kind: input, shape index: {}]   ;;  %s122_s2 = inlined_call_operand.vmem [shape: f32[1,128], index: 2, kind: input, shape index: {}]   ;;  %s123_s3 = inlined_call_operand.vmem [shape: bf16[24,128], index: 3, kind: output, shape index: {}]  }
   0x1   :  { %v14_v0 = vld [vmem:[%s120_s0] sm:$0xff]  ;;  %v15_v1 = vld [vmem:[%s120_s0 + $0x8] sm:$0xff]  ;;  %v16_v6 = vld [vmem:[%s120_s0 + $0x10] sm:$0xff] }
   0x2   :  { %v66_v2 = vld [vmem:[%s121_s1] ss:$0 sm:$0xff] }
   0x3   :  { %v24_v3 = vmul.f32 %v66_v2, %v14_v0  ;;  %v25_v4 = vmul.f32 %v66_v2, %v15_v1  ;;  %v67_v5 = vld [vmem:[%s122_s2] ss:$0 sm:$0xff]  ;;  %v26_v7 = vmul.f32 %v66_v2, %v16_v6 }
   0x5   :  { %v34_v8 = vadd.f32 %v67_v5, %v24_v3  ;;  %v35_v9 = vadd.f32 %v67_v5, %v25_v4  ;;  %v36_v10 = vadd.f32 %v67_v5, %v26_v7 }
   0x7   :  { %vm37_vm0 = vcmp.gt.f32.partialorder %v34_v8, 0.0  ;;  %vm38_vm1 = vcmp.gt.f32.partialorder %v35_v9, 0.0  ;;  %v40_v11 = vmul.f32 0.2, %v34_v8  ;;  %v41_v12 = vmul.f32 0.2, %v35_v9 }
   0x8   :  { %vm39_vm2 = vcmp.gt.f32.partialorder %v36_v10, 0.0  ;;  %v42_v13 = vmul.f32 0.2, %v36_v10 }
   0x9   :  { %v43_v14 = vsel %vm37_vm0, %v34_v8, %v40_v11  ;;  %v44_v15 = vsel %vm38_vm1, %v35_v9, %v41_v12 }
   0xa   :  { %v77_v16 = vpack.c.bf16 %v44_v15, %v43_v14  ;;  %v45_v17 = vsel %vm39_vm2, %v36_v10, %v42_v13 }
   0xb   :  { %v73_v18 = vpack.c.bf16 %v45_v17, %v45_v17 }
   0xc   :  { %78 = vst [vmem:[%s123_s3] sm:$0xff] %v77_v16  }
   0xd   :  { %61 = vst [vmem:[%s123_s3 + $0x8] sm:$0xf] %v73_v18 }

// kernel: _lambda_.11
= control target key start
LH: loop header
LB: loop body
LE: loop exit
PB: predicated region body
PF: predicated region fallthrough
CT: control target
= control target key end

     0   :  { %v363_v21 = vmov 0.0   ;;  %s473_s1 = inlined_call_operand.vmem [shape: bf16[256,128], index: 1, kind: input, shape index: {}]   ;;  %s474_s0 = inlined_call_operand.vmem [shape: bf16[24,256], index: 0, kind: input, shape index: {}]   ;;  %s475_s3 = inlined_call_operand.vmem [shape: f32[1,128], index: 3, kind: output, shape index: {1}]   ;;  %s476_s4 = inlined_call_operand.vmem [shape: f32[1,128], index: 4, kind: output, shape index: {2}]   ;;  %s477_s2 = inlined_call_operand.vmem [shape: f32[24,128], index: 2, kind: output, shape index: {0}]  }
   0x1   :  { %v342_v0 = vld [vmem:[%s473_s1 + $0x40] sm:$0xff]   ;;  %v344_v2 = vld [vmem:[%s473_s1 + $0x48] sm:$0xff]   ;;  %v346_v4 = vld [vmem:[%s473_s1 + $0x50] sm:$0xff]   ;;  %21 = vst [vmem:[%s475_s3] sm:$0x1] %v363_v21 }
   0x2   :  { %v343_v1 = vld [vmem:[%s473_s1] sm:$0xff]   ;;  %297 = vmatprep.subr.bf16.mxu0 %v342_v0  ;;  %325 = vmatprep.subr.bf16.mxu1 %v342_v0  ;;  %v345_v3 = vld [vmem:[%s473_s1 + $0x8] sm:$0xff]   ;;  %v347_v5 = vld [vmem:[%s473_s1 + $0x10] sm:$0xff]   ;;  %22 = vst [vmem:[%s476_s4] sm:$0x1] %v363_v21 }
   0x3   :  { %298 = vmatpush3.bf16.msra.mxu0 %v343_v1  ;;  %333 = vmatpush3.bf16.msra.mxu1 %v343_v1  ;;  %v348_v6 = vld [vmem:[%s473_s1 + $0x58] sm:$0xff]   ;;  %v350_v8 = vld [vmem:[%s473_s1 + $0x60] sm:$0xff]   ;;  %v352_v10 = vld [vmem:[%s473_s1 + $0x68] sm:$0xff]  }
   0x4   :  { %299 = vmatprep.subr.bf16.mxu0 %v344_v2  ;;  %326 = vmatprep.subr.bf16.mxu1 %v344_v2  ;;  %v349_v7 = vld [vmem:[%s473_s1 + $0x18] sm:$0xff]   ;;  %v351_v9 = vld [vmem:[%s473_s1 + $0x20] sm:$0xff]   ;;  %v34_v12 = vld [vmem:[%s474_s0 + $0x10] sm:$0xff] }
   0x5   :  { %v360_v11 = vld [vmem:[%s474_s0 + $0x4] ss:$8 sps:$4 sm:$0xff]   ;;  %v280_v13 = vcombine.high %v34_v12, %v34_v12  ;;  %v354_v15 = vld [vmem:[%s473_s1 + $0x70] sm:$0xff]   ;;  %v356_v17 = vld [vmem:[%s473_s1 + $0x78] sm:$0xff]   ;;  %v279_v20 = vcombine.low %v34_v12, %v34_v12 }
   0x6   :  { %v353_v14 = vld [vmem:[%s473_s1 + $0x28] sm:$0xff]   ;;  %212 = vmatprep.mubr.bf16.mxu0 %v360_v11  ;;  %v355_v16 = vld [vmem:[%s473_s1 + $0x30] sm:$0xff]   ;;  %v357_v18 = vld [vmem:[%s473_s1 + $0x38] sm:$0xff]  }
   0x7   :  { %300 = vmatpush3.bf16.msra.mxu0 %v345_v3  ;;  %334 = vmatpush3.bf16.msra.mxu1 %v345_v3  ;;  %v358_v19 = vld [vmem:[%s474_s0] ss:$8 sps:$4 sm:$0xff]  }
   0x8   :  { %301 = vmatprep.subr.bf16.mxu0 %v346_v4  ;;  %327 = vmatprep.subr.bf16.mxu1 %v346_v4  ;;  %v240_v49 = vld [vmem:[%s475_s3] sm:$0x1] }
   0x9   :  { %220 = vmatprep.mubr.bf16.mxu1 %v280_v13  ;;  %v251_v52 = vld [vmem:[%s476_s4] sm:$0x1] }
   0xb   :  { %302 = vmatpush3.bf16.msra.mxu0 %v347_v5  ;;  %335 = vmatpush3.bf16.msra.mxu1 %v347_v5 }
   0xc   :  { %303 = vmatprep.subr.bf16.mxu0 %v348_v6  ;;  %328 = vmatprep.subr.bf16.mxu1 %v348_v6 }
   0xf   :  { %304 = vmatpush3.bf16.msra.mxu0 %v349_v7  ;;  %336 = vmatpush3.bf16.msra.mxu1 %v349_v7 }
  0x10   :  { %305 = vmatprep.subr.bf16.mxu0 %v350_v8  ;;  %329 = vmatprep.subr.bf16.mxu1 %v350_v8 }
  0x13   :  { %306 = vmatpush3.bf16.msra.mxu0 %v351_v9  ;;  %337 = vmatpush3.bf16.msra.mxu1 %v351_v9 }
  0x14   :  { %307 = vmatprep.subr.bf16.mxu0 %v352_v10  ;;  %330 = vmatprep.subr.bf16.mxu1 %v352_v10 }
  0x17   :  { %308 = vmatpush3.bf16.msra.mxu0 %v353_v14  ;;  %338 = vmatpush3.bf16.msra.mxu1 %v353_v14 }
  0x18   :  { %309 = vmatprep.subr.bf16.mxu0 %v354_v15  ;;  %331 = vmatprep.subr.bf16.mxu1 %v354_v15 }
  0x1b   :  { %310 = vmatpush3.bf16.msra.mxu0 %v355_v16  ;;  %339 = vmatpush3.bf16.msra.mxu1 %v355_v16 }
  0x1c   :  { %311 = vmatprep.subr.bf16.mxu0 %v356_v17  ;;  %332 = vmatprep.subr.bf16.mxu1 %v356_v17 }
  0x1f   :  { %312 = vmatpush3.bf16.msra.mxu0 %v357_v18  ;;  %340 = vmatpush3.bf16.msra.mxu1 %v357_v18 }
  0x22   :  { %213 = vmatmul.mubr.bf16.vlgmr.msra.gmra.mrb[0].mxu0 %v358_v19  ;;  %221 = vmatmul.mubr.bf16.vlgmr.msra.gmra.mrb[0].mxu1 %v279_v20 }
  0xf5   :  { %v313_v22 = vpop.f32.mrb[0].mxu0  ;;  %v319_v23 = vpop.f32.mrb[0].mxu1 }
  0xf6   :  { %v314_v24 = vpop.f32.mrb[1].mxu0  ;;  %v320_v25 = vpop.f32.mrb[1].mxu1 }
  0xf7   :  { %v315_v26 = vadd.f32 %v314_v24, %v313_v22  ;;  %v316_v27 = vpop.f32.mrb[2].mxu0  ;;  %v321_v28 = vadd.f32 %v320_v25, %v319_v23  ;;  %v322_v29 = vpop.f32.mrb[2].mxu1 }
  0xf8   :  { %v317_v30 = vpop.f32.mrb[3].mxu0  ;;  %v323_v31 = vpop.f32.mrb[3].mxu1 }
  0xf9   :  { %v318_v32 = vadd.f32 %v317_v30, %v316_v27  ;;  %231 = vst [vmem:[%s477_s2] sm:$0xff] %v315_v26  ;;  %233 = vst [vmem:[%s477_s2 + $0x10] sm:$0xff] %v321_v28  ;;  %v252_v33 = vmul.f32 %v315_v26, %v315_v26  ;;  %v254_v34 = vmul.f32 %v321_v28, %v321_v28 }
  0xfb   :  { %232 = vst [vmem:[%s477_s2 + $0x8] sm:$0xff] %v318_v32  ;;  %v241_v35 = vadd.f32 %v318_v32, %v315_v26  ;;  %v253_v36 = vmul.f32 %v318_v32, %v318_v32 }
  0xfd   :  { %v242_v37 = vadd.f32 %v321_v28, %v241_v35  ;;  %v255_v38 = vadd.f32 %v253_v36, %v252_v33 }
  0xff   :  { %v243_v39 = vrot.slane %v242_v37, 4  ;;  %v256_v40 = vadd.f32 %v255_v38, %v254_v34 }
 0x101   :  { %v244_v41 = vadd.f32 %v243_v39, %v242_v37  ;;  %v257_v42 = vrot.slane %v256_v40, 4 }
 0x103   :  { %v245_v43 = vrot.slane %v244_v41, 2  ;;  %v258_v44 = vadd.f32 %v257_v42, %v256_v40 }
 0x105   :  { %v246_v45 = vadd.f32 %v245_v43, %v244_v41  ;;  %v259_v46 = vrot.slane %v258_v44, 2 }
 0x107   :  { %v247_v47 = vrot.slane %v246_v45, 1  ;;  %v260_v48 = vadd.f32 %v259_v46, %v258_v44 }
 0x109   :  { %v248_v50 = vadd.f32 %v247_v47, %v246_v45  ;;  %v261_v51 = vrot.slane %v260_v48, 1 }
 0x10b   :  { %v249_v53 = vadd.f32 %v248_v50, %v240_v49  ;;  %v262_v54 = vadd.f32 %v261_v51, %v260_v48 }
 0x10d   :  { %250 = vst [vmem:[%s475_s3] sm:$0x1] %v249_v53  ;;  %v263_v55 = vadd.f32 %v262_v54, %v251_v52 }
 0x10f   :  { %264 = vst [vmem:[%s476_s4] sm:$0x1] %v263_v55 }

// kernel: _lambda_.14
= control target key start
LH: loop header
LB: loop body
LE: loop exit
PB: predicated region body
PF: predicated region fallthrough
CT: control target
= control target key end

     0   :  { %s141_s0 = inlined_call_operand.vmem [shape: f32[32,128], index: 0, kind: input, shape index: {}]   ;;  %s142_s1 = inlined_call_operand.vmem [shape: f32[1,128], index: 1, kind: input, shape index: {}]   ;;  %s143_s2 = inlined_call_operand.vmem [shape: f32[1,128], index: 2, kind: input, shape index: {}]   ;;  %s144_s3 = inlined_call_operand.vmem [shape: bf16[32,128], index: 3, kind: output, shape index: {}]  }
   0x1   :  { %v14_v0 = vld [vmem:[%s141_s0] sm:$0xff]  ;;  %v15_v1 = vld [vmem:[%s141_s0 + $0x8] sm:$0xff]  ;;  %v16_v6 = vld [vmem:[%s141_s0 + $0x10] sm:$0xff] }
   0x2   :  { %v76_v2 = vld [vmem:[%s142_s1] ss:$0 sm:$0xff]  ;;  %v17_v7 = vld [vmem:[%s141_s0 + $0x18] sm:$0xff] }
   0x3   :  { %v25_v3 = vmul.f32 %v76_v2, %v14_v0  ;;  %v26_v4 = vmul.f32 %v76_v2, %v15_v1  ;;  %v77_v5 = vld [vmem:[%s143_s2] ss:$0 sm:$0xff]  ;;  %v27_v8 = vmul.f32 %v76_v2, %v16_v6  ;;  %v28_v9 = vmul.f32 %v76_v2, %v17_v7 }
   0x5   :  { %v36_v10 = vadd.f32 %v77_v5, %v25_v3  ;;  %v37_v11 = vadd.f32 %v77_v5, %v26_v4  ;;  %v38_v12 = vadd.f32 %v77_v5, %v27_v8  ;;  %v39_v13 = vadd.f32 %v77_v5, %v28_v9 }
   0x7   :  { %vm40_vm0 = vcmp.gt.f32.partialorder %v36_v10, 0.0  ;;  %vm41_vm1 = vcmp.gt.f32.partialorder %v37_v11, 0.0  ;;  %v44_v14 = vmul.f32 0.2, %v36_v10  ;;  %v45_v15 = vmul.f32 0.2, %v37_v11 }
   0x8   :  { %vm42_vm2 = vcmp.gt.f32.partialorder %v38_v12, 0.0  ;;  %vm43_vm3 = vcmp.gt.f32.partialorder %v39_v13, 0.0  ;;  %v46_v16 = vmul.f32 0.2, %v38_v12  ;;  %v47_v17 = vmul.f32 0.2, %v39_v13 }
   0x9   :  { %v48_v18 = vsel %vm40_vm0, %v36_v10, %v44_v14  ;;  %v49_v19 = vsel %vm41_vm1, %v37_v11, %v45_v15 }
   0xa   :  { %v89_v20 = vpack.c.bf16 %v49_v19, %v48_v18  ;;  %v50_v21 = vsel %vm42_vm2, %v38_v12, %v46_v16  ;;  %v51_v22 = vsel %vm43_vm3, %v39_v13, %v47_v17 }
   0xb   :  { %v94_v23 = vpack.c.bf16 %v51_v22, %v50_v21 }
   0xc   :  { %90 = vst [vmem:[%s144_s3] sm:$0xff] %v89_v20  }
   0xd   :  { %96 = vst [vmem:[%s144_s3 + $0x8] sm:$0xff] %v94_v23  }

// kernel: _lambda_.13
= control target key start
LH: loop header
LB: loop body
LE: loop exit
PB: predicated region body
PF: predicated region fallthrough
CT: control target
= control target key end

     0   :  { %v632_v40 = vmov 0.0   ;;  %s808_s1 = inlined_call_operand.vmem [shape: bf16[512,128], index: 1, kind: input, shape index: {}]   ;;  %s809_s0 = inlined_call_operand.vmem [shape: bf16[32,512], index: 0, kind: input, shape index: {}]   ;;  %s810_s3 = inlined_call_operand.vmem [shape: f32[1,128], index: 3, kind: output, shape index: {1}]   ;;  %s811_s4 = inlined_call_operand.vmem [shape: f32[1,128], index: 4, kind: output, shape index: {2}]   ;;  %s812_s2 = inlined_call_operand.vmem [shape: f32[32,128], index: 2, kind: output, shape index: {0}]  }
   0x1   :  { %v588_v0 = vld [vmem:[%s808_s1 + $0x40] sm:$0xff]   ;;  %v592_v4 = vld [vmem:[%s808_s1 + $0x48] sm:$0xff]   ;;  %v596_v8 = vld [vmem:[%s808_s1 + $0x50] sm:$0xff]   ;;  %21 = vst [vmem:[%s810_s3] sm:$0x1] %v632_v40 }
   0x2   :  { %v589_v1 = vld [vmem:[%s808_s1 + $0xc0] sm:$0xff]   ;;  %531 = vmatprep.subr.bf16.mxu0 %v588_v0  ;;  %v593_v5 = vld [vmem:[%s808_s1 + $0xc8] sm:$0xff]   ;;  %v597_v9 = vld [vmem:[%s808_s1 + $0xd0] sm:$0xff]   ;;  %22 = vst [vmem:[%s811_s4] sm:$0x1] %v632_v40 }
   0x3   :  { %v590_v2 = vld [vmem:[%s808_s1] sm:$0xff]   ;;  %559 = vmatprep.subr.bf16.mxu1 %v589_v1  ;;  %v594_v6 = vld [vmem:[%s808_s1 + $0x8] sm:$0xff]   ;;  %v598_v10 = vld [vmem:[%s808_s1 + $0x10] sm:$0xff]  }
   0x4   :  { %v591_v3 = vld [vmem:[%s808_s1 + $0x80] sm:$0xff]   ;;  %532 = vmatpush3.bf16.msra.mxu0 %v590_v2  ;;  %v595_v7 = vld [vmem:[%s808_s1 + $0x88] sm:$0xff]   ;;  %v599_v11 = vld [vmem:[%s808_s1 + $0x90] sm:$0xff]  }
   0x5   :  { %560 = vmatpush3.bf16.msra.mxu1 %v591_v3  ;;  %533 = vmatprep.subr.bf16.mxu0 %v592_v4  ;;  %v600_v12 = vld [vmem:[%s808_s1 + $0x58] sm:$0xff]   ;;  %v604_v16 = vld [vmem:[%s808_s1 + $0x60] sm:$0xff]   ;;  %v608_v20 = vld [vmem:[%s808_s1 + $0x68] sm:$0xff]  }
   0x6   :  { %561 = vmatprep.subr.bf16.mxu1 %v593_v5  ;;  %v601_v13 = vld [vmem:[%s808_s1 + $0xd8] sm:$0xff]   ;;  %v605_v17 = vld [vmem:[%s808_s1 + $0xe0] sm:$0xff]   ;;  %v609_v21 = vld [vmem:[%s808_s1 + $0xe8] sm:$0xff]  }
   0x7   :  { %v602_v14 = vld [vmem:[%s808_s1 + $0x18] sm:$0xff]   ;;  %v606_v18 = vld [vmem:[%s808_s1 + $0x20] sm:$0xff]   ;;  %v610_v22 = vld [vmem:[%s808_s1 + $0x28] sm:$0xff]  }
   0x8   :  { %534 = vmatpush3.bf16.msra.mxu0 %v594_v6  ;;  %v603_v15 = vld [vmem:[%s808_s1 + $0x98] sm:$0xff]   ;;  %v607_v19 = vld [vmem:[%s808_s1 + $0xa0] sm:$0xff]   ;;  %v611_v23 = vld [vmem:[%s808_s1 + $0xa8] sm:$0xff]  }
   0x9   :  { %562 = vmatpush3.bf16.msra.mxu1 %v595_v7  ;;  %535 = vmatprep.subr.bf16.mxu0 %v596_v8  ;;  %v612_v24 = vld [vmem:[%s808_s1 + $0x70] sm:$0xff]   ;;  %v616_v28 = vld [vmem:[%s808_s1 + $0x78] sm:$0xff]  }
   0xa   :  { %563 = vmatprep.subr.bf16.mxu1 %v597_v9  ;;  %v613_v25 = vld [vmem:[%s808_s1 + $0xf0] sm:$0xff]   ;;  %v617_v29 = vld [vmem:[%s808_s1 + $0xf8] sm:$0xff]  }
   0xb   :  { %v614_v26 = vld [vmem:[%s808_s1 + $0x30] sm:$0xff]   ;;  %v618_v30 = vld [vmem:[%s808_s1 + $0x38] sm:$0xff]  }
   0xc   :  { %536 = vmatpush3.bf16.msra.mxu0 %v598_v10  ;;  %v615_v27 = vld [vmem:[%s808_s1 + $0xb0] sm:$0xff]   ;;  %v619_v31 = vld [vmem:[%s808_s1 + $0xb8] sm:$0xff]  }
   0xd   :  { %564 = vmatpush3.bf16.msra.mxu1 %v599_v11  ;;  %537 = vmatprep.subr.bf16.mxu0 %v600_v12  ;;  %v620_v32 = vld [vmem:[%s809_s0] ss:$16 sps:$4 sm:$0xff]   ;;  %v622_v33 = vld [vmem:[%s809_s0 + $0x4] ss:$16 sps:$4 sm:$0xff]   ;;  %v623_v34 = vld [vmem:[%s809_s0 + $0x8] ss:$16 sps:$4 sm:$0xff]  }
   0xe   :  { %565 = vmatprep.subr.bf16.mxu1 %v601_v13  ;;  %v625_v35 = vld [vmem:[%s809_s0 + $0xc] ss:$16 sps:$4 sm:$0xff]   ;;  %370 = vmatprep.mubr.bf16.mxu0 %v622_v33  ;;  %v626_v36 = vld [vmem:[%s809_s0 + $0x24] ss:$16 sps:$4 sm:$0xff]   ;;  %v630_v38 = vld [vmem:[%s809_s0 + $0x20] ss:$16 sps:$4 sm:$0xff]  }
   0xf   :  { %419 = vmatprep.mubr.bf16.mxu1 %v625_v35  ;;  %v628_v37 = vld [vmem:[%s809_s0 + $0x2c] ss:$16 sps:$4 sm:$0xff]   ;;  %v631_v39 = vld [vmem:[%s809_s0 + $0x28] ss:$16 sps:$4 sm:$0xff]  }
  0x10   :  { %538 = vmatpush3.bf16.msra.mxu0 %v602_v14 }
  0x11   :  { %566 = vmatpush3.bf16.msra.mxu1 %v603_v15  ;;  %539 = vmatprep.subr.bf16.mxu0 %v604_v16 }
  0x12   :  { %567 = vmatprep.subr.bf16.mxu1 %v605_v17 }
  0x14   :  { %540 = vmatpush3.bf16.msra.mxu0 %v606_v18 }
  0x15   :  { %568 = vmatpush3.bf16.msra.mxu1 %v607_v19  ;;  %541 = vmatprep.subr.bf16.mxu0 %v608_v20 }
  0x16   :  { %569 = vmatprep.subr.bf16.mxu1 %v609_v21 }
  0x18   :  { %542 = vmatpush3.bf16.msra.mxu0 %v610_v22 }
  0x19   :  { %570 = vmatpush3.bf16.msra.mxu1 %v611_v23  ;;  %543 = vmatprep.subr.bf16.mxu0 %v612_v24  ;;  %v451_v24 = vld [vmem:[%s810_s3] sm:$0x1] }
  0x1a   :  { %571 = vmatprep.subr.bf16.mxu1 %v613_v25 }
  0x1c   :  { %544 = vmatpush3.bf16.msra.mxu0 %v614_v26 }
  0x1d   :  { %572 = vmatpush3.bf16.msra.mxu1 %v615_v27  ;;  %545 = vmatprep.subr.bf16.mxu0 %v616_v28  ;;  %v463_v27 = vld [vmem:[%s811_s4] sm:$0x1] }
  0x1e   :  { %573 = vmatprep.subr.bf16.mxu1 %v617_v29 }
  0x20   :  { %546 = vmatpush3.bf16.msra.mxu0 %v618_v30 }
  0x21   :  { %574 = vmatpush3.bf16.msra.mxu1 %v619_v31 }
  0x23   :  { %371 = vmatmul.mubr.bf16.vlgmr.msra.gmra.mrb[0].mxu0 %v620_v32 }
  0x24   :  { %420 = vmatmul.mubr.bf16.vlgmr.msra.gmra.mrb[0].mxu1 %v623_v34  ;;  %378 = vmatprep.mubr.bf16.mxu0 %v626_v36 }
  0x25   :  { %427 = vmatprep.mubr.bf16.mxu1 %v628_v37 }
  0x2b   :  { %379 = vmatmul.mubr.bf16.gmra.mrb[4].mxu0 %v630_v38 }
  0x2c   :  { %428 = vmatmul.mubr.bf16.gmra.mrb[4].mxu1 %v631_v39 }
  0xf6   :  { %v547_v41 = vpop.f32.mrb[0].mxu0 }
  0xf7   :  { %v575_v42 = vpop.f32.mrb[0].mxu1  ;;  %v548_v43 = vpop.f32.mrb[1].mxu0 }
  0xf8   :  { %v549_v44 = vadd.f32 %v548_v43, %v547_v41  ;;  %v576_v45 = vpop.f32.mrb[1].mxu1  ;;  %v550_v46 = vpop.f32.mrb[2].mxu0 }
  0xf9   :  { %v577_v47 = vadd.f32 %v576_v45, %v575_v42  ;;  %v578_v48 = vpop.f32.mrb[2].mxu1  ;;  %v551_v49 = vpop.f32.mrb[3].mxu0 }
  0xfa   :  { %v552_v50 = vadd.f32 %v551_v49, %v550_v46  ;;  %v579_v51 = vpop.f32.mrb[3].mxu1 }
  0xfb   :  { %v422_v52 = vadd.f32 %v577_v47, %v549_v44  ;;  %v580_v53 = vadd.f32 %v579_v51, %v578_v48 }
  0xfd   :  { %v425_v54 = vadd.f32 %v580_v53, %v552_v50  ;;  %440 = vst [vmem:[%s812_s2] sm:$0xff] %v422_v52  ;;  %v464_v61 = vmul.f32 %v422_v52, %v422_v52 }
  0xfe   :  { %v553_v55 = vpop.f32.mrb[4].mxu0 }
  0xff   :  { %v581_v56 = vpop.f32.mrb[4].mxu1  ;;  %v554_v57 = vpop.f32.mrb[5].mxu0  ;;  %441 = vst [vmem:[%s812_s2 + $0x8] sm:$0xff] %v425_v54  ;;  %v452_v62 = vadd.f32 %v425_v54, %v422_v52  ;;  %v465_v63 = vmul.f32 %v425_v54, %v425_v54 }
 0x100   :  { %v555_v58 = vadd.f32 %v554_v57, %v553_v55  ;;  %v582_v59 = vpop.f32.mrb[5].mxu1  ;;  %v556_v60 = vpop.f32.mrb[6].mxu0 }
 0x101   :  { %v583_v0 = vadd.f32 %v582_v59, %v581_v56  ;;  %v584_v1 = vpop.f32.mrb[6].mxu1  ;;  %v557_v2 = vpop.f32.mrb[7].mxu0  ;;  %v468_v5 = vadd.f32 %v465_v63, %v464_v61 }
 0x102   :  { %v558_v3 = vadd.f32 %v557_v2, %v556_v60  ;;  %v585_v4 = vpop.f32.mrb[7].mxu1 }
 0x103   :  { %v430_v6 = vadd.f32 %v583_v0, %v555_v58  ;;  %v586_v7 = vadd.f32 %v585_v4, %v584_v1 }
 0x105   :  { %v433_v8 = vadd.f32 %v586_v7, %v558_v3  ;;  %442 = vst [vmem:[%s812_s2 + $0x10] sm:$0xff] %v430_v6  ;;  %v453_v9 = vadd.f32 %v452_v62, %v430_v6  ;;  %v466_v10 = vmul.f32 %v430_v6, %v430_v6 }
 0x107   :  { %v469_v11 = vadd.f32 %v468_v5, %v466_v10  ;;  %443 = vst [vmem:[%s812_s2 + $0x18] sm:$0xff] %v433_v8  ;;  %v454_v12 = vadd.f32 %v453_v9, %v433_v8  ;;  %v467_v13 = vmul.f32 %v433_v8, %v433_v8 }
 0x109   :  { %v455_v14 = vrot.slane %v454_v12, 4  ;;  %v470_v15 = vadd.f32 %v469_v11, %v467_v13 }
 0x10b   :  { %v456_v16 = vadd.f32 %v455_v14, %v454_v12  ;;  %v471_v17 = vrot.slane %v470_v15, 4 }
 0x10d   :  { %v457_v18 = vrot.slane %v456_v16, 2  ;;  %v472_v19 = vadd.f32 %v471_v17, %v470_v15 }
 0x10f   :  { %v458_v20 = vadd.f32 %v457_v18, %v456_v16  ;;  %v473_v21 = vrot.slane %v472_v19, 2 }
 0x111   :  { %v459_v22 = vrot.slane %v458_v20, 1  ;;  %v474_v23 = vadd.f32 %v473_v21, %v472_v19 }
 0x113   :  { %v460_v25 = vadd.f32 %v459_v22, %v458_v20  ;;  %v475_v26 = vrot.slane %v474_v23, 1 }
 0x115   :  { %v461_v28 = vadd.f32 %v460_v25, %v451_v24  ;;  %v476_v29 = vadd.f32 %v475_v26, %v474_v23 }
 0x117   :  { %462 = vst [vmem:[%s810_s3] sm:$0x1] %v461_v28  ;;  %v477_v30 = vadd.f32 %v476_v29, %v463_v27 }
 0x119   :  { %478 = vst [vmem:[%s811_s4] sm:$0x1] %v477_v30 }

// kernel: _lambda_.15
= control target key start
LH: loop header
LB: loop body
LE: loop exit
PB: predicated region body
PF: predicated region fallthrough
CT: control target
= control target key end

     0   :  { %s1181_s12 = smov 0   ;;  %s1183_s13 = smov 0   ;;  %s1322_s0 = inlined_call_operand.vmem [shape: bf16[56,1024], index: 0, kind: input, shape index: {}]   ;;  %s1323_s1 = inlined_call_operand.vmem [shape: bf16[1024,128], index: 1, kind: input, shape index: {}]   ;;  %s1324_s2 = inlined_call_operand.vmem [shape: f32[1,128], index: 2, kind: input, shape index: {}]   ;;  %s1325_s3 = inlined_call_operand.vmem [shape: f32[56,128], index: 3, kind: output, shape index: {}]  }
   0x1   :  { %s1185_s14 = smov 0   ;;  %s1187_s15 = smov 0  }
   0x2   :  { %s1189_s16 = smov 0  }
   0x3 LB: > { %s22_s17 = sadd.s32 1, %s1154_s15  ;;  %p41_p1 = scmp.ne.s32.totalorder %s1146_s13, %s1142_s12  ;;  %s1158_s16 = sphi %s1189_s16, %s13_s16   ;;  %s1154_s15 = sphi %s1187_s15, %s1329_s15   ;;  %s1150_s14 = sphi %s1185_s14, %s1328_s14   ;;  %s1146_s13 = sphi %s1183_s13, %s1327_s13   ;;  %s1142_s12 = sphi %s1181_s12, %s1326_s12  }
   0x4   : > { %p23_p0 = scmp.ge.s32.totalorder %s22_s17, 2  ;;  %p42_p2 = scmp.eq.s32.totalorder %s1158_s16, 0 }
   0x5   : > { %s34_s19 = sadd.s32 1, %s1146_s13  ;;  %p881_p5 = scmp.ge.s32.totalorder %s1158_s16, 2 }
   0x6   : > { %s1331_s17 = smov (%p23_p0, %s22_s17), 0  ;;  %p43_p3 = por %p42_p2, %p41_p1 }
   0x7   : > { %s30_s18 = ssub.s32 %s1154_s15, %s1331_s17  ;;  %143 = sbr.rel (%p881_p5) target bundleno = 25 (0x19), region = 20 }
   0x8   : > { %p32_p4 = scmp.eq.s32.totalorder %s30_s18, 0 }
   0xa   : > { %s1216_s20 = scalar_select %p32_p4, %s1146_s13, %s34_s19  }
   0xe   : > { %146 = sbr.rel (!%p43_p3) target bundleno = 25 (0x19), region = 24  ;;  %s148_s21 = sand.u32 (%p43_p3), 1, %s1146_s13  }
   0xf   : > { %s942_s22 = sshll.u32 (%p43_p3), %s1154_s15, 4  ;;  %s1023_s23 = smul.u32 (%p43_p3), 112, %s148_s21 }
  0x10   : > { %s156_s26 = scalar_lea.vmem (%p43_p3), %s1322_s0, %s942_s22 }
  0x11   : > { %v169_v0 = vld [vmem:[%s156_s26] sm:$0xff] (%p43_p3)  ;;  %v171_v1 = vld [vmem:[%s156_s26 + $0x8] sm:$0xff] (%p43_p3)  ;;  %s150_s27 = scalar_lea.vmem (%p43_p3), [#allocation3], %s1023_s23 }
  0x12   : > { %v173_v2 = vld [vmem:[%s156_s26 + $0x20] sm:$0xff] (%p43_p3)  ;;  %v175_v3 = vld [vmem:[%s156_s26 + $0x28] sm:$0xff] (%p43_p3)  ;;  %170 = vst [vmem:[%s150_s27] sm:$0xff] (%p43_p3), %v169_v0  ;;  %172 = vst [vmem:[%s150_s27 + $0x8] sm:$0xff] (%p43_p3), %v171_v1 }
  0x13   : > { %v177_v4 = vld [vmem:[%s156_s26 + $0x40] sm:$0xff] (%p43_p3)  ;;  %v179_v5 = vld [vmem:[%s156_s26 + $0x48] sm:$0xff] (%p43_p3)  ;;  %174 = vst [vmem:[%s150_s27 + $0x10] sm:$0xff] (%p43_p3), %v173_v2  ;;  %176 = vst [vmem:[%s150_s27 + $0x18] sm:$0xff] (%p43_p3), %v175_v3 }
  0x14   : > { %178 = vst [vmem:[%s150_s27 + $0x20] sm:$0xff] (%p43_p3), %v177_v4  ;;  %180 = vst [vmem:[%s150_s27 + $0x28] sm:$0xff] (%p43_p3), %v179_v5  ;;  %v181_v6 = vld [vmem:[%s156_s26 + $0x60] sm:$0xff] (%p43_p3)  ;;  %v183_v7 = vld [vmem:[%s156_s26 + $0x68] sm:$0xff] (%p43_p3) }
  0x15   : > { %v185_v8 = vld [vmem:[%s156_s26 + $0x80] sm:$0xff]  ;;  %182 = vst [vmem:[%s150_s27 + $0x30] sm:$0xff] %v181_v6  ;;  %184 = vst [vmem:[%s150_s27 + $0x38] sm:$0xff] %v183_v7  ;;  %v187_v9 = vld [vmem:[%s156_s26 + $0x88] sm:$0xff] }
  0x16   : > { %186 = vst [vmem:[%s150_s27 + $0x40] sm:$0xff] %v185_v8  ;;  %v189_v10 = vld [vmem:[%s156_s26 + $0xa0] sm:$0xff]  ;;  %v191_v11 = vld [vmem:[%s156_s26 + $0xa8] sm:$0xff]  ;;  %188 = vst [vmem:[%s150_s27 + $0x48] sm:$0xff] %v187_v9 }
  0x17   : > { %190 = vst [vmem:[%s150_s27 + $0x50] sm:$0xff] %v189_v10  ;;  %192 = vst [vmem:[%s150_s27 + $0x58] sm:$0xff] %v191_v11  ;;  %v193_v12 = vld [vmem:[%s156_s26 + $0xc0] sm:$0xff]  ;;  %v195_v13 = vld [vmem:[%s156_s26 + $0xc8] sm:$0xff] }
  0x18   : > { %194 = vst [vmem:[%s150_s27 + $0x60] sm:$0xff] %v193_v12  ;;  %196 = vst [vmem:[%s150_s27 + $0x68] sm:$0xff] %v195_v13 }
  0x19 PF: > { %p884_p6 = scmp.ge.s32.totalorder %s1158_s16, 1  ;;  %p210_p7 = scmp.lt.s32.totalorder %s1158_s16, 3 }
  0x1b   : > { %p211_p8 = pnand %p884_p6, %p210_p7 }
  0x1c   : > { %s217_s28 = sand.u32 (!%p211_p8), 1, %s1142_s12   ;;  %s885_s29 = sshll.u32 (!%p211_p8), %s1150_s14, 6 }
  0x1d   : > { %214 = sbr.rel (%p211_p8) target bundleno = 332 (0x14c), region = 51  ;;  %p248_p9 = scmp.lt.s32.totalorder (!%p211_p8), %s885_s29, 127 }
  0x1e   : > { %s1024_s30 = smul.u32 (!%p211_p8), 112, %s217_s28  ;;  %p887_p10 = scmp.ne.s32.totalorder (!%p211_p8), %s1150_s14, 0 }
  0x20   : > { %s1233_s8 = scalar_lea.vmem (!%p211_p8), [#allocation3], %s1024_s30 }
  0x24   : > { %s1333_s29 = smov (!%p248_p9, %s885_s29), 127  ;;  %263 = sbr.rel (%p887_p10) target bundleno = 43 (0x2b), region = 59 }
  0x25   : > { %s886_s4 = sshll.u32 %s1333_s29, 2  ;;  %v1160_v14 = vmov (!%p887_p10), 0.0  }
  0x26   : > { %s1231_s7 = scalar_lea.vmem %s1323_s1, %s886_s4  ;;  %264 = vst [vmem:[#allocation2] sm:$0xff] (!%p887_p10), %v1160_v14  ;;  %265 = vst [vmem:[#allocation2 + $0x8] sm:$0xff] (!%p887_p10), %v1160_v14 }
  0x27   : > { %266 = vst [vmem:[#allocation2 + $0x10] sm:$0xff] (!%p887_p10), %v1160_v14  ;;  %267 = vst [vmem:[#allocation2 + $0x18] sm:$0xff] (!%p887_p10), %v1160_v14 }
  0x28   : > { %268 = vst [vmem:[#allocation2 + $0x20] sm:$0xff] (!%p887_p10), %v1160_v14  ;;  %269 = vst [vmem:[#allocation2 + $0x28] sm:$0xff] (!%p887_p10), %v1160_v14 }
  0x29   : > { %270 = vst [vmem:[#allocation2 + $0x30] sm:$0xff] (!%p887_p10), %v1160_v14 }
  0x2b PF: > { %v1066_v15 = vld [vmem:[%s1231_s7 + $0x40] sm:$0xff]   ;;  %v1070_v19 = vld [vmem:[%s1231_s7 + $0x48] sm:$0xff]   ;;  %v1074_v23 = vld [vmem:[%s1231_s7 + $0x50] sm:$0xff]   ;;  %p936_p11 = scmp.ne.s32.totalorder %s1150_s14, 1 }
  0x2c   : > { %v1067_v16 = vld [vmem:[%s1231_s7 + $0xc0] sm:$0xff]   ;;  %943 = vmatprep.subr.bf16.mxu0 %v1066_v15  ;;  %v1071_v20 = vld [vmem:[%s1231_s7 + $0xc8] sm:$0xff]   ;;  %v1075_v24 = vld [vmem:[%s1231_s7 + $0xd0] sm:$0xff]  }
  0x2d   : > { %v1068_v17 = vld [vmem:[%s1231_s7] sm:$0xff]   ;;  %983 = vmatprep.subr.bf16.mxu1 %v1067_v16  ;;  %v1072_v21 = vld [vmem:[%s1231_s7 + $0x8] sm:$0xff]   ;;  %v1076_v25 = vld [vmem:[%s1231_s7 + $0x10] sm:$0xff]  }
  0x2e   : > { %v1069_v18 = vld [vmem:[%s1231_s7 + $0x80] sm:$0xff]   ;;  %944 = vmatpush3.bf16.msra.mxu0 %v1068_v17  ;;  %v1073_v22 = vld [vmem:[%s1231_s7 + $0x88] sm:$0xff]   ;;  %v1077_v26 = vld [vmem:[%s1231_s7 + $0x90] sm:$0xff]  }
  0x2f   : > { %984 = vmatpush3.bf16.msra.mxu1 %v1069_v18  ;;  %945 = vmatprep.subr.bf16.mxu0 %v1070_v19  ;;  %v1078_v27 = vld [vmem:[%s1231_s7 + $0x58] sm:$0xff]   ;;  %v1082_v31 = vld [vmem:[%s1231_s7 + $0x60] sm:$0xff]   ;;  %v1086_v35 = vld [vmem:[%s1231_s7 + $0x68] sm:$0xff]  }
  0x30   : > { %985 = vmatprep.subr.bf16.mxu1 %v1071_v20  ;;  %v1079_v28 = vld [vmem:[%s1231_s7 + $0xd8] sm:$0xff]   ;;  %v1083_v32 = vld [vmem:[%s1231_s7 + $0xe0] sm:$0xff]   ;;  %v1087_v36 = vld [vmem:[%s1231_s7 + $0xe8] sm:$0xff]  }
  0x31   : > { %v1080_v29 = vld [vmem:[%s1231_s7 + $0x18] sm:$0xff]   ;;  %v1084_v33 = vld [vmem:[%s1231_s7 + $0x20] sm:$0xff]   ;;  %v1088_v37 = vld [vmem:[%s1231_s7 + $0x28] sm:$0xff]  }
  0x32   : > { %946 = vmatpush3.bf16.msra.mxu0 %v1072_v21  ;;  %v1081_v30 = vld [vmem:[%s1231_s7 + $0x98] sm:$0xff]   ;;  %v1085_v34 = vld [vmem:[%s1231_s7 + $0xa0] sm:$0xff]   ;;  %v1089_v38 = vld [vmem:[%s1231_s7 + $0xa8] sm:$0xff]  }
  0x33   : > { %986 = vmatpush3.bf16.msra.mxu1 %v1073_v22  ;;  %947 = vmatprep.subr.bf16.mxu0 %v1074_v23  ;;  %v1090_v39 = vld [vmem:[%s1231_s7 + $0x70] sm:$0xff]   ;;  %v1094_v43 = vld [vmem:[%s1231_s7 + $0x78] sm:$0xff]   ;;  %v271_v10 = vld [vmem:[#allocation2] sm:$0xff] }
  0x34   : > { %987 = vmatprep.subr.bf16.mxu1 %v1075_v24  ;;  %v1091_v40 = vld [vmem:[%s1231_s7 + $0xf0] sm:$0xff]   ;;  %v1095_v44 = vld [vmem:[%s1231_s7 + $0xf8] sm:$0xff]   ;;  %v272_v15 = vld [vmem:[#allocation2 + $0x8] sm:$0xff] }
  0x35   : > { %v1092_v41 = vld [vmem:[%s1231_s7 + $0x30] sm:$0xff]   ;;  %v1096_v45 = vld [vmem:[%s1231_s7 + $0x38] sm:$0xff]  }
  0x36   : > { %948 = vmatpush3.bf16.msra.mxu0 %v1076_v25  ;;  %v1093_v42 = vld [vmem:[%s1231_s7 + $0xb0] sm:$0xff]   ;;  %v1097_v46 = vld [vmem:[%s1231_s7 + $0xb8] sm:$0xff]  }
  0x37   : > { %988 = vmatpush3.bf16.msra.mxu1 %v1077_v26  ;;  %949 = vmatprep.subr.bf16.mxu0 %v1078_v27  ;;  %v1098_v47 = vld [vmem:[%s1233_s8] ss:$16 sps:$4 sm:$0xff]   ;;  %v1100_v48 = vld [vmem:[%s1233_s8 + $0x4] ss:$16 sps:$4 sm:$0xff]   ;;  %v1101_v49 = vld [vmem:[%s1233_s8 + $0x8] ss:$16 sps:$4 sm:$0xff]  }
  0x38   : > { %989 = vmatprep.subr.bf16.mxu1 %v1079_v28  ;;  %v1103_v50 = vld [vmem:[%s1233_s8 + $0xc] ss:$16 sps:$4 sm:$0xff]   ;;  %654 = vmatprep.mubr.bf16.mxu0 %v1100_v48  ;;  %v1104_v51 = vld [vmem:[%s1233_s8 + $0x24] ss:$16 sps:$4 sm:$0xff]   ;;  %v1108_v53 = vld [vmem:[%s1233_s8 + $0x20] ss:$16 sps:$4 sm:$0xff]  }
  0x39   : > { %718 = vmatprep.mubr.bf16.mxu1 %v1103_v50  ;;  %v1106_v52 = vld [vmem:[%s1233_s8 + $0x2c] ss:$16 sps:$4 sm:$0xff]   ;;  %v1109_v54 = vld [vmem:[%s1233_s8 + $0x28] ss:$16 sps:$4 sm:$0xff]   ;;  %v1110_v55 = vld [vmem:[%s1233_s8 + $0x44] ss:$16 sps:$4 sm:$0xff]  }
  0x3a   : > { %950 = vmatpush3.bf16.msra.mxu0 %v1080_v29  ;;  %v1112_v56 = vld [vmem:[%s1233_s8 + $0x4c] ss:$16 sps:$4 sm:$0xff]   ;;  %v290_v57 = vld [vmem:[%s1233_s8 + $0x60] sm:$0xff]  ;;  %v1115_v60 = vld [vmem:[%s1233_s8 + $0x48] ss:$16 sps:$4 sm:$0xff]  }
  0x3b   : > { %990 = vmatpush3.bf16.msra.mxu1 %v1081_v30  ;;  %951 = vmatprep.subr.bf16.mxu0 %v1082_v31  ;;  %v291_v58 = vld [vmem:[%s1233_s8 + $0x68] sm:$0xff]  ;;  %v1114_v59 = vld [vmem:[%s1233_s8 + $0x40] ss:$16 sps:$4 sm:$0xff]   ;;  %v901_v61 = vcombine.high %v290_v57, %v290_v57  ;;  %v900_v63 = vcombine.low %v290_v57, %v290_v57 }
  0x3c   : > { %991 = vmatprep.subr.bf16.mxu1 %v1083_v32  ;;  %v903_v62 = vcombine.high %v291_v58, %v291_v58  ;;  %v902_v0 = vcombine.low %v291_v58, %v291_v58  ;;  %v273_v28 = vld [vmem:[#allocation2 + $0x10] sm:$0xff] }
  0x3e   : > { %952 = vmatpush3.bf16.msra.mxu0 %v1084_v33  ;;  %v274_v33 = vld [vmem:[#allocation2 + $0x18] sm:$0xff] }
  0x3f   : > { %992 = vmatpush3.bf16.msra.mxu1 %v1085_v34  ;;  %953 = vmatprep.subr.bf16.mxu0 %v1086_v35 }
  0x40   : > { %993 = vmatprep.subr.bf16.mxu1 %v1087_v36 }
  0x42   : > { %954 = vmatpush3.bf16.msra.mxu0 %v1088_v37 }
  0x43   : > { %994 = vmatpush3.bf16.msra.mxu1 %v1089_v38  ;;  %955 = vmatprep.subr.bf16.mxu0 %v1090_v39 }
  0x44   : > { %995 = vmatprep.subr.bf16.mxu1 %v1091_v40 }
  0x46   : > { %956 = vmatpush3.bf16.msra.mxu0 %v1092_v41 }
  0x47   : > { %996 = vmatpush3.bf16.msra.mxu1 %v1093_v42  ;;  %957 = vmatprep.subr.bf16.mxu0 %v1094_v43 }
  0x48   : > { %997 = vmatprep.subr.bf16.mxu1 %v1095_v44 }
  0x4a   : > { %958 = vmatpush3.bf16.msra.mxu0 %v1096_v45 }
  0x4b   : > { %998 = vmatpush3.bf16.msra.mxu1 %v1097_v46  ;;  %v275_v46 = vld [vmem:[#allocation2 + $0x20] sm:$0xff] }
  0x4d   : > { %655 = vmatmul.mubr.bf16.vlgmr.msra.gmra.mrb[0].mxu0 %v1098_v47 }
  0x4e   : > { %719 = vmatmul.mubr.bf16.vlgmr.msra.gmra.mrb[0].mxu1 %v1101_v49  ;;  %662 = vmatprep.mubr.bf16.mxu0 %v1104_v51  ;;  %v276_v51 = vld [vmem:[#allocation2 + $0x28] sm:$0xff] }
  0x4f   : > { %726 = vmatprep.mubr.bf16.mxu1 %v1106_v52 }
  0x55   : > { %663 = vmatmul.mubr.bf16.gmra.mrb[4].mxu0 %v1108_v53 }
  0x56   : > { %727 = vmatmul.mubr.bf16.gmra.mrb[4].mxu1 %v1109_v54  ;;  %670 = vmatprep.mubr.bf16.mxu0 %v1110_v55 }
  0x57   : > { %734 = vmatprep.mubr.bf16.mxu1 %v1112_v56 }
  0x5d   : > { %671 = vmatmul.mubr.bf16.gmra.mrb[8].mxu0 %v1114_v59 }
  0x5e   : > { %735 = vmatmul.mubr.bf16.gmra.mrb[8].mxu1 %v1115_v60  ;;  %678 = vmatprep.mubr.bf16.mxu0 %v901_v61 }
  0x5f   : > { %742 = vmatprep.mubr.bf16.mxu1 %v903_v62 }
  0x65   : > { %679 = vmatmul.mubr.bf16.gmra.mrb[12].mxu0 %v900_v63 }
  0x66   : > { %743 = vmatmul.mubr.bf16.gmra.mrb[12].mxu1 %v902_v0  ;;  %v277_v0 = vld [vmem:[#allocation2 + $0x30] sm:$0xff] }
 0x120   : > { %v959_v1 = vpop.f32.mrb[0].mxu0 }
 0x121   : > { %v999_v2 = vpop.f32.mrb[0].mxu1  ;;  %v960_v3 = vpop.f32.mrb[1].mxu0 }
 0x122   : > { %v961_v4 = vadd.f32 %v960_v3, %v959_v1  ;;  %v1000_v5 = vpop.f32.mrb[1].mxu1  ;;  %v962_v6 = vpop.f32.mrb[2].mxu0 }
 0x123   : > { %v1001_v7 = vadd.f32 %v1000_v5, %v999_v2  ;;  %v1002_v8 = vpop.f32.mrb[2].mxu1  ;;  %v963_v9 = vpop.f32.mrb[3].mxu0  ;;  %v937_v5 = vld [vmem:[%s1324_s2] ss:$0 sm:$0xff] (!%p936_p11) }
 0x124   : > { %v964_v11 = vadd.f32 %v963_v9, %v962_v6  ;;  %v1003_v12 = vpop.f32.mrb[3].mxu1 }
 0x125   : > { %v721_v13 = vadd.f32 %v1001_v7, %v961_v4  ;;  %v1004_v14 = vadd.f32 %v1003_v12, %v1002_v8 }
 0x127   : > { %v750_v16 = vadd.f32 %v721_v13, %v271_v10  ;;  %v724_v17 = vadd.f32 %v1004_v14, %v964_v11 }
 0x128   : > { %v965_v18 = vpop.f32.mrb[4].mxu0 }
 0x129   : > { %757 = vst [vmem:[#allocation2] sm:$0xff] %v750_v16  ;;  %v751_v19 = vadd.f32 %v724_v17, %v272_v15  ;;  %v1005_v20 = vpop.f32.mrb[4].mxu1  ;;  %v966_v21 = vpop.f32.mrb[5].mxu0 }
 0x12a   : > { %v967_v22 = vadd.f32 %v966_v21, %v965_v18  ;;  %v1006_v23 = vpop.f32.mrb[5].mxu1  ;;  %v968_v24 = vpop.f32.mrb[6].mxu0 }
 0x12b   : > { %758 = vst [vmem:[#allocation2 + $0x8] sm:$0xff] %v751_v19  ;;  %v1007_v25 = vadd.f32 %v1006_v23, %v1005_v20  ;;  %v1008_v26 = vpop.f32.mrb[6].mxu1  ;;  %v969_v27 = vpop.f32.mrb[7].mxu0 }
 0x12c   : > { %v970_v29 = vadd.f32 %v969_v27, %v968_v24  ;;  %v1009_v30 = vpop.f32.mrb[7].mxu1 }
 0x12d   : > { %v729_v31 = vadd.f32 %v1007_v25, %v967_v22  ;;  %v1010_v32 = vadd.f32 %v1009_v30, %v1008_v26 }
 0x12f   : > { %v752_v34 = vadd.f32 %v729_v31, %v273_v28  ;;  %v732_v35 = vadd.f32 %v1010_v32, %v970_v29 }
 0x130   : > { %v971_v36 = vpop.f32.mrb[8].mxu0  ;;  %v768_v4 = vld [vmem:[#allocation2] sm:$0xff] (!%p936_p11) }
 0x131   : > { %759 = vst [vmem:[#allocation2 + $0x10] sm:$0xff] %v752_v34  ;;  %v753_v37 = vadd.f32 %v732_v35, %v274_v33  ;;  %v1011_v38 = vpop.f32.mrb[8].mxu1  ;;  %v972_v39 = vpop.f32.mrb[9].mxu0  ;;  %v782_v7 = vadd.f32 (!%p936_p11), %v937_v5, %v768_v4 }
 0x132   : > { %v973_v40 = vadd.f32 %v972_v39, %v971_v36  ;;  %v1012_v41 = vpop.f32.mrb[9].mxu1  ;;  %v974_v42 = vpop.f32.mrb[10].mxu0  ;;  %v769_v6 = vld [vmem:[#allocation2 + $0x8] sm:$0xff] (!%p936_p11) }
 0x133   : > { %760 = vst [vmem:[#allocation2 + $0x18] sm:$0xff] %v753_v37  ;;  %v1013_v43 = vadd.f32 %v1012_v41, %v1011_v38  ;;  %v1014_v44 = vpop.f32.mrb[10].mxu1  ;;  %v975_v45 = vpop.f32.mrb[11].mxu0  ;;  %v783_v8 = vadd.f32 (!%p936_p11), %v937_v5, %v769_v6  ;;  %789 = vst [vmem:[%s1325_s3] sm:$0xff] (!%p936_p11), %v782_v7 }
 0x134   : > { %v976_v47 = vadd.f32 %v975_v45, %v974_v42  ;;  %v1015_v48 = vpop.f32.mrb[11].mxu1 }
 0x135   : > { %v737_v49 = vadd.f32 %v1013_v43, %v973_v40  ;;  %v1016_v50 = vadd.f32 %v1015_v48, %v1014_v44  ;;  %790 = vst [vmem:[%s1325_s3 + $0x8] sm:$0xff] (!%p936_p11), %v783_v8 }
 0x137   : > { %v754_v52 = vadd.f32 %v737_v49, %v275_v46  ;;  %v740_v53 = vadd.f32 %v1016_v50, %v976_v47 }
 0x138   : > { %v977_v54 = vpop.f32.mrb[12].mxu0  ;;  %v770_v9 = vld [vmem:[#allocation2 + $0x10] sm:$0xff] (!%p936_p11) }
 0x139   : > { %761 = vst [vmem:[#allocation2 + $0x20] sm:$0xff] %v754_v52  ;;  %v755_v55 = vadd.f32 %v740_v53, %v276_v51  ;;  %v1017_v56 = vpop.f32.mrb[12].mxu1  ;;  %v978_v57 = vpop.f32.mrb[13].mxu0  ;;  %v784_v12 = vadd.f32 (!%p936_p11), %v937_v5, %v770_v9 }
 0x13a   : > { %v979_v58 = vadd.f32 %v978_v57, %v977_v54  ;;  %v1018_v59 = vpop.f32.mrb[13].mxu1  ;;  %v980_v60 = vpop.f32.mrb[14].mxu0  ;;  %v771_v10 = vld [vmem:[#allocation2 + $0x18] sm:$0xff] (!%p936_p11) }
 0x13b   : > { %762 = vst [vmem:[#allocation2 + $0x28] sm:$0xff] %v755_v55  ;;  %v1019_v61 = vadd.f32 %v1018_v59, %v1017_v56  ;;  %v1020_v62 = vpop.f32.mrb[14].mxu1  ;;  %v981_v63 = vpop.f32.mrb[15].mxu0  ;;  %767 = sbr.rel (%p936_p11) target bundleno = 332 (0x14c), region = 63  ;;  %v785_v13 = vadd.f32 (!%p936_p11), %v937_v5, %v771_v10  ;;  %791 = vst [vmem:[%s1325_s3 + $0x10] sm:$0xff] (!%p936_p11), %v784_v12 }
 0x13c   : > { %v1021_v1 = vpop.f32.mrb[15].mxu1 }
 0x13d   : > { %v745_v2 = vadd.f32 %v1019_v61, %v979_v58  ;;  %792 = vst [vmem:[%s1325_s3 + $0x18] sm:$0xff] (!%p936_p11), %v785_v13 }
 0x13f   : > { %v756_v3 = vadd.f32 %v745_v2, %v277_v0 }
 0x140   : > { %v772_v11 = vld [vmem:[#allocation2 + $0x20] sm:$0xff] (!%p936_p11) }
 0x141   : > { %763 = vst [vmem:[#allocation2 + $0x30] sm:$0xff] %v756_v3  ;;  %v786_v14 = vadd.f32 (!%p936_p11), %v937_v5, %v772_v11 }
 0x142   : > { %v773_v15 = vld [vmem:[#allocation2 + $0x28] sm:$0xff] }
 0x143   : > { %v787_v17 = vadd.f32 %v937_v5, %v773_v15  ;;  %793 = vst [vmem:[%s1325_s3 + $0x20] sm:$0xff] %v786_v14 }
 0x145   : > { %794 = vst [vmem:[%s1325_s3 + $0x28] sm:$0xff] %v787_v17 }
 0x148   : > { %v774_v16 = vld [vmem:[#allocation2 + $0x30] sm:$0xff] }
 0x149   : > { %v788_v18 = vadd.f32 %v937_v5, %v774_v16 }
 0x14b   : > { %795 = vst [vmem:[%s1325_s3 + $0x30] sm:$0xff] %v788_v18 }
 0x14c PF: > { %s13_s16 = sadd.s32 1, %s1158_s16   ;;  %s1326_s12 = smov %s1146_s13 }
 0x14d   : > { %p10_p12 = scmp.ge.s32.totalorder %s13_s16, 4   ;;  %s1327_s13 = smov %s1216_s20 }
 0x14e   : > { %s1328_s14 = smov %s1154_s15  ;;  %s1329_s15 = smov %s1331_s17 }
 0x14f   :  { %12 = sbr.rel (!%p10_p12) target bundleno = 3 (0x3), region = 101 }

</bundles_post_ra>
